<compile_context>
chip_gen: v7x
topology: tpu7x:2x2x1
jax: 0.10.0
libtpu: 0.0.40
codegen_flags: <defaults>
</compile_context>

<pallas_src>
import jax
import jax.numpy as jnp
from jax import lax
from jax.experimental import pallas as pl
from jax.experimental.pallas import tpu as pltpu


def lstm_tagger_kernel(x_ref, wih_ref, whh_ref, b_ref, wtag_ref, btag_ref,
                       lens_ref, tag_ref, gates_sc, hseq_sc, h_sc, c_sc):
    # x_ref    : (T, TB, E)   bf16 embedded tokens (time-major batch tile)
    # wih_ref  : (E, 4H)      bf16 W_ih^T   (PyTorch gate order i, f, g, o)
    # whh_ref  : (H, 4H)      bf16 W_hh^T
    # b_ref    : (1, 4H)      f32  b_ih + b_hh
    # wtag_ref : (H, Kp)      bf16 hidden2tag.weight^T, lane-padded
    # btag_ref : (1, Kp)      f32  hidden2tag.bias, lane-padded
    # lens_ref : (TB, 1)      int32 sequence lengths for this batch tile
    # tag_ref  : (T, TB, Kp)  f32  output tag_space (time-major, lane-dense)
    # gates_sc : (T*TB, 4H)   f32  hoisted x @ W_ih^T + b
    # hseq_sc  : (T*TB, H)    bf16 masked hidden outputs
    # h_sc,c_sc: (TB, H)      f32  recurrent state
    T, TB, E = x_ref.shape
    H = whh_ref.shape[0]
    Kp = wtag_ref.shape[1]

    # --- Hoisted input projection: one bf16 matmul, f32 accumulation.
    # Reshape only merges the time dim with a sublane-multiple batch tile
    # (TB % 16 == 0) and leaves the lane dim untouched -> layout-preserving.
    x2d = x_ref[...].reshape(T * TB, E)
    gates_sc[...] = (jnp.dot(x2d, wih_ref[...],
                             preferred_element_type=jnp.float32)
                     + b_ref[...])

    h_sc[...] = jnp.zeros_like(h_sc)
    c_sc[...] = jnp.zeros_like(c_sc)
    lens_col = lens_ref[...]                     # (TB, 1) int32, hoisted

    def step(t, carry):
        row = pl.multiple_of(t * TB, TB)
        # Only the true recurrence (h @ W_hh) stays inside the loop.
        gates = gates_sc[pl.ds(row, TB), :] + jnp.dot(
            h_sc[...].astype(jnp.bfloat16), whh_ref[...],
            preferred_element_type=jnp.float32)
        i_g = jax.nn.sigmoid(gates[:, 0 * H:1 * H])
        f_g = jax.nn.sigmoid(gates[:, 1 * H:2 * H])
        g_g = jnp.tanh(gates[:, 2 * H:3 * H])
        o_g = jax.nn.sigmoid(gates[:, 3 * H:4 * H])

        c_new = f_g * c_sc[...] + i_g * g_g
        h_new = o_g * jnp.tanh(c_new)
        c_sc[...] = c_new
        h_sc[...] = h_new

        # pack/pad semantics: zero output at padded positions (before linear).
        hseq_sc[pl.ds(row, TB), :] = jnp.where(
            lens_col > t, h_new, 0.0).astype(hseq_sc.dtype)
        return carry

    # Full unroll only for short sequences; partial unroll keeps vreg pressure
    # bounded at large T.
    lax.fori_loop(0, T, step, 0, unroll=(True if T <= 8 else 8))

    # --- Hoisted tag projection: one bf16 matmul + lane-dense bulk store.
    tag = (jnp.dot(hseq_sc[...], wtag_ref[...],
                   preferred_element_type=jnp.float32)
           + btag_ref[...])                                    # (T*TB, Kp)
    tag_ref[...] = tag.reshape(T, TB, Kp).astype(tag_ref.dtype)


def _round_up(a, m):
    return ((a + m - 1) // m) * m


def lstm_tagger_forward(sentence, lens_batch, params, tile_b_target=128):
    """sentence: (B, T) int32 token ids; lens_batch: (B,) int32 lengths."""
    emb = params["embedding"]                    # (V, E)
    embeds = jnp.take(emb, sentence, axis=0)     # (B, T, E)  embedding gather (glue)
    B, T, E = embeds.shape
    H = params["w_hh"].shape[1]
    K = params["w_tag"].shape[0]

    # Pad batch to a multiple of 16 (sublane packing valid for f32 and bf16),
    # then pick a batch tile sized toward the MXU width.
    Bp = _round_up(B, 16)
    tile_b = _round_up(min(tile_b_target, Bp), 16)
    Bp = _round_up(Bp, tile_b)
    if Bp // tile_b == 1 and Bp >= 32 and (Bp // 2) % 16 == 0:
        tile_b = Bp // 2                         # >=2 parallel tiles for v7x's 2 TCs
    pad_b = Bp - B

    x_tm = jnp.transpose(embeds, (1, 0, 2)).astype(jnp.bfloat16)   # (T, B, E)
    if pad_b:
        x_tm = jnp.pad(x_tm, ((0, 0), (0, pad_b), (0, 0)))
    lens2d = jnp.pad(lens_batch.astype(jnp.int32), (0, pad_b))[:, None]  # (Bp,1)

    # Lane-dense output: pad the tag dimension up to a multiple of 128 lanes.
    Kp = max(128, _round_up(K, 128))
    wtag_T = jnp.zeros((H, Kp), jnp.bfloat16).at[:, :K].set(
        params["w_tag"].T.astype(jnp.bfloat16))
    btag = jnp.zeros((1, Kp), jnp.float32).at[0, :K].set(params["b_tag"])

    wih_T = params["w_ih"].T.astype(jnp.bfloat16)                 # (E, 4H)
    whh_T = params["w_hh"].T.astype(jnp.bfloat16)                 # (H, 4H)
    b = (params["b_ih"] + params["b_hh"]).reshape(1, 4 * H).astype(jnp.float32)

    grid_b = Bp // tile_b
    tag_tm = pl.pallas_call(
        lstm_tagger_kernel,
        out_shape=jax.ShapeDtypeStruct((T, Bp, Kp), jnp.float32),
        grid_spec=pltpu.PrefetchScalarGridSpec(
            num_scalar_prefetch=0,
            grid=(grid_b,),                      # independent batch tiles
            in_specs=[
                pl.BlockSpec((T, tile_b, E), lambda i: (0, i, 0)),
                pl.BlockSpec((E, 4 * H), lambda i: (0, 0)),
                pl.BlockSpec((H, 4 * H), lambda i: (0, 0)),
                pl.BlockSpec((1, 4 * H), lambda i: (0, 0)),
                pl.BlockSpec((H, Kp), lambda i: (0, 0)),
                pl.BlockSpec((1, Kp), lambda i: (0, 0)),
                pl.BlockSpec((tile_b, 1), lambda i: (i, 0)),
            ],
            out_specs=pl.BlockSpec((T, tile_b, Kp), lambda i: (0, i, 0)),
            scratch_shapes=[
                pltpu.VMEM((T * tile_b, 4 * H), jnp.float32),   # hoisted gates
                pltpu.VMEM((T * tile_b, H), jnp.bfloat16),      # masked hidden seq
                pltpu.VMEM((tile_b, H), jnp.float32),           # h state
                pltpu.VMEM((tile_b, H), jnp.float32),           # c state
            ],
        ),
        compiler_params=pltpu.CompilerParams(
            dimension_semantics=("parallel",)),  # batch tiles -> 2 TCs on v7x
    )(x_tm, wih_T, whh_T, b, wtag_T, btag, lens2d)

    return jnp.transpose(tag_tm[:, :B, :K], (1, 0, 2))      # (B, T, K)


def lstm_tagger_reference(sentence, lens_batch, params):
    """Pure-JAX f32 reference of the same forward pass (correctness check)."""
    emb = params["embedding"]
    embeds = jnp.take(emb, sentence, axis=0)     # (B, T, E)
    B, T, _ = embeds.shape
    H = params["w_hh"].shape[1]
    w_ih, w_hh = params["w_ih"], params["w_hh"]
    b = params["b_ih"] + params["b_hh"]

    def step(carry, x_t):
        h, c = carry
        gates = x_t @ w_ih.T + h @ w_hh.T + b
        i, f, g, o = jnp.split(gates, 4, axis=-1)
        i = jax.nn.sigmoid(i)
        f = jax.nn.sigmoid(f)
        g = jnp.tanh(g)
        o = jax.nn.sigmoid(o)
        c = f * c + i * g
        h = o * jnp.tanh(c)
        return (h, c), h

    x_tm = jnp.transpose(embeds, (1, 0, 2))
    _, hs = lax.scan(step, (jnp.zeros((B, H)), jnp.zeros((B, H))), x_tm)
    mask = (jnp.arange(T)[:, None] < lens_batch[None, :]
            ).astype(jnp.float32)[..., None]
    lstm_out = jnp.transpose(hs * mask, (1, 0, 2))     # (B, T, H)
    return lstm_out @ params["w_tag"].T + params["b_tag"]


def make_params(key, vocab_size, embedding_dim, hidden_dim, tagset_size):
    ks = jax.random.split(key, 7)
    s = 0.1
    return {
        "embedding": jax.random.normal(ks[0], (vocab_size, embedding_dim), jnp.float32) * s,
        "w_ih": jax.random.normal(ks[1], (4 * hidden_dim, embedding_dim), jnp.float32) * s,
        "w_hh": jax.random.normal(ks[2], (4 * hidden_dim, hidden_dim), jnp.float32) * s,
        "b_ih": jax.random.normal(ks[3], (4 * hidden_dim,), jnp.float32) * s,
        "b_hh": jax.random.normal(ks[4], (4 * hidden_dim,), jnp.float32) * s,
        "w_tag": jax.random.normal(ks[5], (tagset_size, hidden_dim), jnp.float32) * s,
        "b_tag": jax.random.normal(ks[6], (tagset_size,), jnp.float32) * s,
    }


if __name__ == "__main__":
    # small config: vocab=50, E=32, H=32, tagset=8, B=4, T=8
    vocab_size, embedding_dim, hidden_dim, tagset_size = 50, 32, 32, 8
    B, T = 4, 8

    key = jax.random.PRNGKey(0)
    k_param, k_tok = jax.random.split(key)
    params = make_params(k_param, vocab_size, embedding_dim, hidden_dim, tagset_size)

    sentence = jax.random.randint(k_tok, (B, T), 0, vocab_size, dtype=jnp.int32)
    lens_batch = jnp.array([8, 6, 5, 3], dtype=jnp.int32)   # sorted desc, like packing

    tag_space = lstm_tagger_forward(sentence, lens_batch, params)
    tag_space = jax.block_until_ready(tag_space)

    ref = jax.block_until_ready(lstm_tagger_reference(sentence, lens_batch, params))
    assert tag_space.shape == (B, T, tagset_size)
    # bf16 MXU operands (f32 accumulation) -> widened tolerance vs. f32 reference.
    assert jnp.allclose(tag_space, ref, atol=2e-2, rtol=2e-2), "mismatch vs reference"

    print("KERNEL_OK")
</pallas_src>

<mosaic_0001>
module attributes {stable_mosaic.version = 11 : i64} {
  func.func @lstm_tagger_kernel(%arg0: i32, %arg1: memref<8x16x32xbf16, #tpu.memory_space<vmem>>, %arg2: memref<32x128xbf16, #tpu.memory_space<vmem>>, %arg3: memref<32x128xbf16, #tpu.memory_space<vmem>>, %arg4: memref<1x128xf32, #tpu.memory_space<vmem>>, %arg5: memref<32x128xbf16, #tpu.memory_space<vmem>>, %arg6: memref<1x128xf32, #tpu.memory_space<vmem>>, %arg7: memref<16x1xi32, #tpu.memory_space<vmem>>, %arg8: memref<8x16x128xf32, #tpu.memory_space<vmem>>, %arg9: memref<128x128xf32, #tpu.memory_space<vmem>>, %arg10: memref<128x32xbf16, #tpu.memory_space<vmem>>, %arg11: memref<16x32xf32, #tpu.memory_space<vmem>>, %arg12: memref<16x32xf32, #tpu.memory_space<vmem>>) attributes {dimension_semantics = [#tpu.dimension_semantics<parallel>], iteration_bounds = array<i64: 1>, scalar_prefetch = 0 : i64, scratch_operands = 4 : i64, tpu.core_type = #tpu.core_type<tc>, window_params = [{transform_indices = @transform_0, window_bounds = array<i64: 8, 16, 32>}, {pipeline_mode = #tpu.pipeline_mode<synchronous>, transform_indices = @transform_1, window_bounds = array<i64: 32, 128>}, {pipeline_mode = #tpu.pipeline_mode<synchronous>, transform_indices = @transform_2, window_bounds = array<i64: 32, 128>}, {pipeline_mode = #tpu.pipeline_mode<synchronous>, transform_indices = @transform_3, window_bounds = array<i64: 1, 128>}, {pipeline_mode = #tpu.pipeline_mode<synchronous>, transform_indices = @transform_4, window_bounds = array<i64: 32, 128>}, {pipeline_mode = #tpu.pipeline_mode<synchronous>, transform_indices = @transform_5, window_bounds = array<i64: 1, 128>}, {transform_indices = @transform_6, window_bounds = array<i64: 16, 1>}, {transform_indices = @transform_7, window_bounds = array<i64: 8, 16, 128>}]} {
    %c0 = arith.constant 0 : index
    %c0_0 = arith.constant 0 : index
    %c0_1 = arith.constant 0 : index
    %0 = vector.load %arg1[%c0, %c0_0, %c0_1] : memref<8x16x32xbf16, #tpu.memory_space<vmem>>, vector<8x16x32xbf16>
    %1 = vector.shape_cast %0 : vector<8x16x32xbf16> to vector<128x32xbf16>
    %c0_2 = arith.constant 0 : index
    %c0_3 = arith.constant 0 : index
    %2 = vector.load %arg2[%c0_2, %c0_3] : memref<32x128xbf16, #tpu.memory_space<vmem>>, vector<32x128xbf16>
    %cst = arith.constant dense<0.000000e+00> : vector<128x128xf32>
    %3 = tpu.matmul %1, %2, %cst {dimension_numbers = #tpu.dot_dimension_numbers<[1], [0], [0], [1], [0, 0, 1, 1], [], []>} : vector<128x32xbf16>, vector<32x128xbf16>, vector<128x128xf32> -> vector<128x128xf32>
    %c0_4 = arith.constant 0 : index
    %c0_5 = arith.constant 0 : index
    %4 = vector.load %arg4[%c0_4, %c0_5] : memref<1x128xf32, #tpu.memory_space<vmem>>, vector<1x128xf32>
    %5 = vector.broadcast %4 : vector<1x128xf32> to vector<128x128xf32>
    %6 = arith.addf %3, %5 : vector<128x128xf32>
    %c0_6 = arith.constant 0 : index
    %c0_7 = arith.constant 0 : index
    %7 = vector.load %arg9[%c0_6, %c0_7] : memref<128x128xf32, #tpu.memory_space<vmem>>, vector<128x128xf32>
    tpu.vector_store %arg9[%c0_6, %c0_7], %6 {strides = array<i32>} : memref<128x128xf32, #tpu.memory_space<vmem>>, vector<128x128xf32>,
    %cst_8 = arith.constant 0.000000e+00 : f32
    %8 = vector.broadcast %cst_8 : f32 to vector<16x32xf32>
    %c0_9 = arith.constant 0 : index
    %c0_10 = arith.constant 0 : index
    %9 = vector.load %arg11[%c0_9, %c0_10] : memref<16x32xf32, #tpu.memory_space<vmem>>, vector<16x32xf32>
    tpu.vector_store %arg11[%c0_9, %c0_10], %8 {strides = array<i32>} : memref<16x32xf32, #tpu.memory_space<vmem>>, vector<16x32xf32>,
    %cst_11 = arith.constant 0.000000e+00 : f32
    %10 = vector.broadcast %cst_11 : f32 to vector<16x32xf32>
    %c0_12 = arith.constant 0 : index
    %c0_13 = arith.constant 0 : index
    %11 = vector.load %arg12[%c0_12, %c0_13] : memref<16x32xf32, #tpu.memory_space<vmem>>, vector<16x32xf32>
    tpu.vector_store %arg12[%c0_12, %c0_13], %10 {strides = array<i32>} : memref<16x32xf32, #tpu.memory_space<vmem>>, vector<16x32xf32>,
    %c0_14 = arith.constant 0 : index
    %c0_15 = arith.constant 0 : index
    %12 = vector.load %arg7[%c0_14, %c0_15] : memref<16x1xi32, #tpu.memory_space<vmem>>, vector<16x1xi32>
    %c0_i32 = arith.constant 0 : i32
    %c16_i32 = arith.constant 16 : i32
    %13 = arith.muli %c0_i32, %c16_i32 : i32
    %14 = tpu.assume_multiple %13, 16 : i32
    %15 = arith.index_cast %14 : i32 to index
    %c0_16 = arith.constant 0 : index
    %16 = vector.load %arg9[%15, %c0_16] : memref<128x128xf32, #tpu.memory_space<vmem>>, vector<16x128xf32>
    %c0_17 = arith.constant 0 : index
    %c0_18 = arith.constant 0 : index
    %17 = vector.load %arg11[%c0_17, %c0_18] : memref<16x32xf32, #tpu.memory_space<vmem>>, vector<16x32xf32>
    %18 = arith.truncf %17 : vector<16x32xf32> to vector<16x32xbf16>
    %c0_19 = arith.constant 0 : index
    %c0_20 = arith.constant 0 : index
    %19 = vector.load %arg3[%c0_19, %c0_20] : memref<32x128xbf16, #tpu.memory_space<vmem>>, vector<32x128xbf16>
    %cst_21 = arith.constant dense<0.000000e+00> : vector<16x128xf32>
    %20 = tpu.matmul %18, %19, %cst_21 {dimension_numbers = #tpu.dot_dimension_numbers<[1], [0], [0], [1], [0, 0, 1, 1], [], []>} : vector<16x32xbf16>, vector<32x128xbf16>, vector<16x128xf32> -> vector<16x128xf32>
    %21 = arith.addf %16, %20 : vector<16x128xf32>
    %22 = vector.extract_strided_slice %21 {offsets = [0, 0], sizes = [16, 32], strides = [1, 1]} : vector<16x128xf32> to vector<16x32xf32>
    %23 = arith.negf %22 : vector<16x32xf32>
    %24 = math.exp %23 : vector<16x32xf32>
    %cst_22 = arith.constant 1.000000e+00 : f32
    %25 = vector.broadcast %cst_22 : f32 to vector<16x32xf32>
    %26 = arith.addf %25, %24 : vector<16x32xf32>
    %27 = arith.divf %25, %26 : vector<16x32xf32>
    %28 = vector.extract_strided_slice %21 {offsets = [0, 32], sizes = [16, 32], strides = [1, 1]} : vector<16x128xf32> to vector<16x32xf32>
    %29 = arith.negf %28 : vector<16x32xf32>
    %30 = math.exp %29 : vector<16x32xf32>
    %cst_23 = arith.constant 1.000000e+00 : f32
    %31 = vector.broadcast %cst_23 : f32 to vector<16x32xf32>
    %32 = arith.addf %31, %30 : vector<16x32xf32>
    %33 = arith.divf %31, %32 : vector<16x32xf32>
    %34 = vector.extract_strided_slice %21 {offsets = [0, 64], sizes = [16, 32], strides = [1, 1]} : vector<16x128xf32> to vector<16x32xf32>
    %35 = math.tanh %34 : vector<16x32xf32>
    %36 = vector.extract_strided_slice %21 {offsets = [0, 96], sizes = [16, 32], strides = [1, 1]} : vector<16x128xf32> to vector<16x32xf32>
    %37 = arith.negf %36 : vector<16x32xf32>
    %38 = math.exp %37 : vector<16x32xf32>
    %cst_24 = arith.constant 1.000000e+00 : f32
    %39 = vector.broadcast %cst_24 : f32 to vector<16x32xf32>
    %40 = arith.addf %39, %38 : vector<16x32xf32>
    %41 = arith.divf %39, %40 : vector<16x32xf32>
    %c0_25 = arith.constant 0 : index
    %c0_26 = arith.constant 0 : index
    %42 = vector.load %arg12[%c0_25, %c0_26] : memref<16x32xf32, #tpu.memory_space<vmem>>, vector<16x32xf32>
    %43 = arith.mulf %33, %42 : vector<16x32xf32>
    %44 = arith.mulf %27, %35 : vector<16x32xf32>
    %45 = arith.addf %43, %44 : vector<16x32xf32>
    %46 = math.tanh %45 : vector<16x32xf32>
    %47 = arith.mulf %41, %46 : vector<16x32xf32>
    %c0_27 = arith.constant 0 : index
    %c0_28 = arith.constant 0 : index
    %48 = vector.load %arg12[%c0_27, %c0_28] : memref<16x32xf32, #tpu.memory_space<vmem>>, vector<16x32xf32>
    tpu.vector_store %arg12[%c0_27, %c0_28], %45 {strides = array<i32>} : memref<16x32xf32, #tpu.memory_space<vmem>>, vector<16x32xf32>,
    %c0_29 = arith.constant 0 : index
    %c0_30 = arith.constant 0 : index
    %49 = vector.load %arg11[%c0_29, %c0_30] : memref<16x32xf32, #tpu.memory_space<vmem>>, vector<16x32xf32>
    tpu.vector_store %arg11[%c0_29, %c0_30], %47 {strides = array<i32>} : memref<16x32xf32, #tpu.memory_space<vmem>>, vector<16x32xf32>,
    %50 = vector.broadcast %c0_i32 : i32 to vector<16x1xi32>
    %51 = arith.cmpi sgt, %12, %50 : vector<16x1xi32>
    %cst_31 = arith.constant 0.000000e+00 : f32
    %52 = vector.shape_cast %51 : vector<16x1xi1> to vector<16x1xi1>
    %53 = vector.broadcast %52 : vector<16x1xi1> to vector<16x32xi1>
    %54 = vector.broadcast %cst_31 : f32 to vector<16x32xf32>
    %55 = arith.select %53, %47, %54 : vector<16x32xi1>, vector<16x32xf32>
    %56 = arith.truncf %55 : vector<16x32xf32> to vector<16x32xbf16>
    %57 = arith.index_cast %14 : i32 to index
    %c0_32 = arith.constant 0 : index
    %58 = vector.load %arg10[%57, %c0_32] : memref<128x32xbf16, #tpu.memory_space<vmem>>, vector<16x32xbf16>
    tpu.vector_store %arg10[%57, %c0_32], %56 {strides = array<i32>} : memref<128x32xbf16, #tpu.memory_space<vmem>>, vector<16x32xbf16>,
    %c1_i32 = arith.constant 1 : i32
    %c16_i32_33 = arith.constant 16 : i32
    %59 = arith.muli %c1_i32, %c16_i32_33 : i32
    %60 = tpu.assume_multiple %59, 16 : i32
    %61 = arith.index_cast %60 : i32 to index
    %c0_34 = arith.constant 0 : index
    %62 = vector.load %arg9[%61, %c0_34] : memref<128x128xf32, #tpu.memory_space<vmem>>, vector<16x128xf32>
    %c0_35 = arith.constant 0 : index
    %c0_36 = arith.constant 0 : index
    %63 = vector.load %arg11[%c0_35, %c0_36] : memref<16x32xf32, #tpu.memory_space<vmem>>, vector<16x32xf32>
    %64 = arith.truncf %63 : vector<16x32xf32> to vector<16x32xbf16>
    %c0_37 = arith.constant 0 : index
    %c0_38 = arith.constant 0 : index
    %65 = vector.load %arg3[%c0_37, %c0_38] : memref<32x128xbf16, #tpu.memory_space<vmem>>, vector<32x128xbf16>
    %cst_39 = arith.constant dense<0.000000e+00> : vector<16x128xf32>
    %66 = tpu.matmul %64, %65, %cst_39 {dimension_numbers = #tpu.dot_dimension_numbers<[1], [0], [0], [1], [0, 0, 1, 1], [], []>} : vector<16x32xbf16>, vector<32x128xbf16>, vector<16x128xf32> -> vector<16x128xf32>
    %67 = arith.addf %62, %66 : vector<16x128xf32>
    %68 = vector.extract_strided_slice %67 {offsets = [0, 0], sizes = [16, 32], strides = [1, 1]} : vector<16x128xf32> to vector<16x32xf32>
    %69 = arith.negf %68 : vector<16x32xf32>
    %70 = math.exp %69 : vector<16x32xf32>
    %cst_40 = arith.constant 1.000000e+00 : f32
    %71 = vector.broadcast %cst_40 : f32 to vector<16x32xf32>
    %72 = arith.addf %71, %70 : vector<16x32xf32>
    %73 = arith.divf %71, %72 : vector<16x32xf32>
    %74 = vector.extract_strided_slice %67 {offsets = [0, 32], sizes = [16, 32], strides = [1, 1]} : vector<16x128xf32> to vector<16x32xf32>
    %75 = arith.negf %74 : vector<16x32xf32>
    %76 = math.exp %75 : vector<16x32xf32>
    %cst_41 = arith.constant 1.000000e+00 : f32
    %77 = vector.broadcast %cst_41 : f32 to vector<16x32xf32>
    %78 = arith.addf %77, %76 : vector<16x32xf32>
    %79 = arith.divf %77, %78 : vector<16x32xf32>
    %80 = vector.extract_strided_slice %67 {offsets = [0, 64], sizes = [16, 32], strides = [1, 1]} : vector<16x128xf32> to vector<16x32xf32>
    %81 = math.tanh %80 : vector<16x32xf32>
    %82 = vector.extract_strided_slice %67 {offsets = [0, 96], sizes = [16, 32], strides = [1, 1]} : vector<16x128xf32> to vector<16x32xf32>
    %83 = arith.negf %82 : vector<16x32xf32>
    %84 = math.exp %83 : vector<16x32xf32>
    %cst_42 = arith.constant 1.000000e+00 : f32
    %85 = vector.broadcast %cst_42 : f32 to vector<16x32xf32>
    %86 = arith.addf %85, %84 : vector<16x32xf32>
    %87 = arith.divf %85, %86 : vector<16x32xf32>
    %c0_43 = arith.constant 0 : index
    %c0_44 = arith.constant 0 : index
    %88 = vector.load %arg12[%c0_43, %c0_44] : memref<16x32xf32, #tpu.memory_space<vmem>>, vector<16x32xf32>
    %89 = arith.mulf %79, %88 : vector<16x32xf32>
    %90 = arith.mulf %73, %81 : vector<16x32xf32>
    %91 = arith.addf %89, %90 : vector<16x32xf32>
    %92 = math.tanh %91 : vector<16x32xf32>
    %93 = arith.mulf %87, %92 : vector<16x32xf32>
    %c0_45 = arith.constant 0 : index
    %c0_46 = arith.constant 0 : index
    %94 = vector.load %arg12[%c0_45, %c0_46] : memref<16x32xf32, #tpu.memory_space<vmem>>, vector<16x32xf32>
    tpu.vector_store %arg12[%c0_45, %c0_46], %91 {strides = array<i32>} : memref<16x32xf32, #tpu.memory_space<vmem>>, vector<16x32xf32>,
    %c0_47 = arith.constant 0 : index
    %c0_48 = arith.constant 0 : index
    %95 = vector.load %arg11[%c0_47, %c0_48] : memref<16x32xf32, #tpu.memory_space<vmem>>, vector<16x32xf32>
    tpu.vector_store %arg11[%c0_47, %c0_48], %93 {strides = array<i32>} : memref<16x32xf32, #tpu.memory_space<vmem>>, vector<16x32xf32>,
    %96 = vector.broadcast %c1_i32 : i32 to vector<16x1xi32>
    %97 = arith.cmpi sgt, %12, %96 : vector<16x1xi32>
    %cst_49 = arith.constant 0.000000e+00 : f32
    %98 = vector.shape_cast %97 : vector<16x1xi1> to vector<16x1xi1>
    %99 = vector.broadcast %98 : vector<16x1xi1> to vector<16x32xi1>
    %100 = vector.broadcast %cst_49 : f32 to vector<16x32xf32>
    %101 = arith.select %99, %93, %100 : vector<16x32xi1>, vector<16x32xf32>
    %102 = arith.truncf %101 : vector<16x32xf32> to vector<16x32xbf16>
    %103 = arith.index_cast %60 : i32 to index
    %c0_50 = arith.constant 0 : index
    %104 = vector.load %arg10[%103, %c0_50] : memref<128x32xbf16, #tpu.memory_space<vmem>>, vector<16x32xbf16>
    tpu.vector_store %arg10[%103, %c0_50], %102 {strides = array<i32>} : memref<128x32xbf16, #tpu.memory_space<vmem>>, vector<16x32xbf16>,
    %c2_i32 = arith.constant 2 : i32
    %c16_i32_51 = arith.constant 16 : i32
    %105 = arith.muli %c2_i32, %c16_i32_51 : i32
    %106 = tpu.assume_multiple %105, 16 : i32
    %107 = arith.index_cast %106 : i32 to index
    %c0_52 = arith.constant 0 : index
    %108 = vector.load %arg9[%107, %c0_52] : memref<128x128xf32, #tpu.memory_space<vmem>>, vector<16x128xf32>
    %c0_53 = arith.constant 0 : index
    %c0_54 = arith.constant 0 : index
    %109 = vector.load %arg11[%c0_53, %c0_54] : memref<16x32xf32, #tpu.memory_space<vmem>>, vector<16x32xf32>
    %110 = arith.truncf %109 : vector<16x32xf32> to vector<16x32xbf16>
    %c0_55 = arith.constant 0 : index
    %c0_56 = arith.constant 0 : index
    %111 = vector.load %arg3[%c0_55, %c0_56] : memref<32x128xbf16, #tpu.memory_space<vmem>>, vector<32x128xbf16>
    %cst_57 = arith.constant dense<0.000000e+00> : vector<16x128xf32>
    %112 = tpu.matmul %110, %111, %cst_57 {dimension_numbers = #tpu.dot_dimension_numbers<[1], [0], [0], [1], [0, 0, 1, 1], [], []>} : vector<16x32xbf16>, vector<32x128xbf16>, vector<16x128xf32> -> vector<16x128xf32>
    %113 = arith.addf %108, %112 : vector<16x128xf32>
    %114 = vector.extract_strided_slice %113 {offsets = [0, 0], sizes = [16, 32], strides = [1, 1]} : vector<16x128xf32> to vector<16x32xf32>
    %115 = arith.negf %114 : vector<16x32xf32>
    %116 = math.exp %115 : vector<16x32xf32>
    %cst_58 = arith.constant 1.000000e+00 : f32
    %117 = vector.broadcast %cst_58 : f32 to vector<16x32xf32>
    %118 = arith.addf %117, %116 : vector<16x32xf32>
    %119 = arith.divf %117, %118 : vector<16x32xf32>
    %120 = vector.extract_strided_slice %113 {offsets = [0, 32], sizes = [16, 32], strides = [1, 1]} : vector<16x128xf32> to vector<16x32xf32>
    %121 = arith.negf %120 : vector<16x32xf32>
    %122 = math.exp %121 : vector<16x32xf32>
    %cst_59 = arith.constant 1.000000e+00 : f32
    %123 = vector.broadcast %cst_59 : f32 to vector<16x32xf32>
    %124 = arith.addf %123, %122 : vector<16x32xf32>
    %125 = arith.divf %123, %124 : vector<16x32xf32>
    %126 = vector.extract_strided_slice %113 {offsets = [0, 64], sizes = [16, 32], strides = [1, 1]} : vector<16x128xf32> to vector<16x32xf32>
    %127 = math.tanh %126 : vector<16x32xf32>
    %128 = vector.extract_strided_slice %113 {offsets = [0, 96], sizes = [16, 32], strides = [1, 1]} : vector<16x128xf32> to vector<16x32xf32>
    %129 = arith.negf %128 : vector<16x32xf32>
    %130 = math.exp %129 : vector<16x32xf32>
    %cst_60 = arith.constant 1.000000e+00 : f32
    %131 = vector.broadcast %cst_60 : f32 to vector<16x32xf32>
    %132 = arith.addf %131, %130 : vector<16x32xf32>
    %133 = arith.divf %131, %132 : vector<16x32xf32>
    %c0_61 = arith.constant 0 : index
    %c0_62 = arith.constant 0 : index
    %134 = vector.load %arg12[%c0_61, %c0_62] : memref<16x32xf32, #tpu.memory_space<vmem>>, vector<16x32xf32>
    %135 = arith.mulf %125, %134 : vector<16x32xf32>
    %136 = arith.mulf %119, %127 : vector<16x32xf32>
    %137 = arith.addf %135, %136 : vector<16x32xf32>
    %138 = math.tanh %137 : vector<16x32xf32>
    %139 = arith.mulf %133, %138 : vector<16x32xf32>
    %c0_63 = arith.constant 0 : index
    %c0_64 = arith.constant 0 : index
    %140 = vector.load %arg12[%c0_63, %c0_64] : memref<16x32xf32, #tpu.memory_space<vmem>>, vector<16x32xf32>
    tpu.vector_store %arg12[%c0_63, %c0_64], %137 {strides = array<i32>} : memref<16x32xf32, #tpu.memory_space<vmem>>, vector<16x32xf32>,
    %c0_65 = arith.constant 0 : index
    %c0_66 = arith.constant 0 : index
    %141 = vector.load %arg11[%c0_65, %c0_66] : memref<16x32xf32, #tpu.memory_space<vmem>>, vector<16x32xf32>
    tpu.vector_store %arg11[%c0_65, %c0_66], %139 {strides = array<i32>} : memref<16x32xf32, #tpu.memory_space<vmem>>, vector<16x32xf32>,
    %142 = vector.broadcast %c2_i32 : i32 to vector<16x1xi32>
    %143 = arith.cmpi sgt, %12, %142 : vector<16x1xi32>
    %cst_67 = arith.constant 0.000000e+00 : f32
    %144 = vector.shape_cast %143 : vector<16x1xi1> to vector<16x1xi1>
    %145 = vector.broadcast %144 : vector<16x1xi1> to vector<16x32xi1>
    %146 = vector.broadcast %cst_67 : f32 to vector<16x32xf32>
    %147 = arith.select %145, %139, %146 : vector<16x32xi1>, vector<16x32xf32>
    %148 = arith.truncf %147 : vector<16x32xf32> to vector<16x32xbf16>
    %149 = arith.index_cast %106 : i32 to index
    %c0_68 = arith.constant 0 : index
    %150 = vector.load %arg10[%149, %c0_68] : memref<128x32xbf16, #tpu.memory_space<vmem>>, vector<16x32xbf16>
    tpu.vector_store %arg10[%149, %c0_68], %148 {strides = array<i32>} : memref<128x32xbf16, #tpu.memory_space<vmem>>, vector<16x32xbf16>,
    %c3_i32 = arith.constant 3 : i32
    %c16_i32_69 = arith.constant 16 : i32
    %151 = arith.muli %c3_i32, %c16_i32_69 : i32
    %152 = tpu.assume_multiple %151, 16 : i32
    %153 = arith.index_cast %152 : i32 to index
    %c0_70 = arith.constant 0 : index
    %154 = vector.load %arg9[%153, %c0_70] : memref<128x128xf32, #tpu.memory_space<vmem>>, vector<16x128xf32>
    %c0_71 = arith.constant 0 : index
    %c0_72 = arith.constant 0 : index
    %155 = vector.load %arg11[%c0_71, %c0_72] : memref<16x32xf32, #tpu.memory_space<vmem>>, vector<16x32xf32>
    %156 = arith.truncf %155 : vector<16x32xf32> to vector<16x32xbf16>
    %c0_73 = arith.constant 0 : index
    %c0_74 = arith.constant 0 : index
    %157 = vector.load %arg3[%c0_73, %c0_74] : memref<32x128xbf16, #tpu.memory_space<vmem>>, vector<32x128xbf16>
    %cst_75 = arith.constant dense<0.000000e+00> : vector<16x128xf32>
    %158 = tpu.matmul %156, %157, %cst_75 {dimension_numbers = #tpu.dot_dimension_numbers<[1], [0], [0], [1], [0, 0, 1, 1], [], []>} : vector<16x32xbf16>, vector<32x128xbf16>, vector<16x128xf32> -> vector<16x128xf32>
    %159 = arith.addf %154, %158 : vector<16x128xf32>
    %160 = vector.extract_strided_slice %159 {offsets = [0, 0], sizes = [16, 32], strides = [1, 1]} : vector<16x128xf32> to vector<16x32xf32>
    %161 = arith.negf %160 : vector<16x32xf32>
    %162 = math.exp %161 : vector<16x32xf32>
    %cst_76 = arith.constant 1.000000e+00 : f32
    %163 = vector.broadcast %cst_76 : f32 to vector<16x32xf32>
    %164 = arith.addf %163, %162 : vector<16x32xf32>
    %165 = arith.divf %163, %164 : vector<16x32xf32>
    %166 = vector.extract_strided_slice %159 {offsets = [0, 32], sizes = [16, 32], strides = [1, 1]} : vector<16x128xf32> to vector<16x32xf32>
    %167 = arith.negf %166 : vector<16x32xf32>
    %168 = math.exp %167 : vector<16x32xf32>
    %cst_77 = arith.constant 1.000000e+00 : f32
    %169 = vector.broadcast %cst_77 : f32 to vector<16x32xf32>
    %170 = arith.addf %169, %168 : vector<16x32xf32>
    %171 = arith.divf %169, %170 : vector<16x32xf32>
    %172 = vector.extract_strided_slice %159 {offsets = [0, 64], sizes = [16, 32], strides = [1, 1]} : vector<16x128xf32> to vector<16x32xf32>
    %173 = math.tanh %172 : vector<16x32xf32>
    %174 = vector.extract_strided_slice %159 {offsets = [0, 96], sizes = [16, 32], strides = [1, 1]} : vector<16x128xf32> to vector<16x32xf32>
    %175 = arith.negf %174 : vector<16x32xf32>
    %176 = math.exp %175 : vector<16x32xf32>
    %cst_78 = arith.constant 1.000000e+00 : f32
    %177 = vector.broadcast %cst_78 : f32 to vector<16x32xf32>
    %178 = arith.addf %177, %176 : vector<16x32xf32>
    %179 = arith.divf %177, %178 : vector<16x32xf32>
    %c0_79 = arith.constant 0 : index
    %c0_80 = arith.constant 0 : index
    %180 = vector.load %arg12[%c0_79, %c0_80] : memref<16x32xf32, #tpu.memory_space<vmem>>, vector<16x32xf32>
    %181 = arith.mulf %171, %180 : vector<16x32xf32>
    %182 = arith.mulf %165, %173 : vector<16x32xf32>
    %183 = arith.addf %181, %182 : vector<16x32xf32>
    %184 = math.tanh %183 : vector<16x32xf32>
    %185 = arith.mulf %179, %184 : vector<16x32xf32>
    %c0_81 = arith.constant 0 : index
    %c0_82 = arith.constant 0 : index
    %186 = vector.load %arg12[%c0_81, %c0_82] : memref<16x32xf32, #tpu.memory_space<vmem>>, vector<16x32xf32>
    tpu.vector_store %arg12[%c0_81, %c0_82], %183 {strides = array<i32>} : memref<16x32xf32, #tpu.memory_space<vmem>>, vector<16x32xf32>,
    %c0_83 = arith.constant 0 : index
    %c0_84 = arith.constant 0 : index
    %187 = vector.load %arg11[%c0_83, %c0_84] : memref<16x32xf32, #tpu.memory_space<vmem>>, vector<16x32xf32>
    tpu.vector_store %arg11[%c0_83, %c0_84], %185 {strides = array<i32>} : memref<16x32xf32, #tpu.memory_space<vmem>>, vector<16x32xf32>,
    %188 = vector.broadcast %c3_i32 : i32 to vector<16x1xi32>
    %189 = arith.cmpi sgt, %12, %188 : vector<16x1xi32>
    %cst_85 = arith.constant 0.000000e+00 : f32
    %190 = vector.shape_cast %189 : vector<16x1xi1> to vector<16x1xi1>
    %191 = vector.broadcast %190 : vector<16x1xi1> to vector<16x32xi1>
    %192 = vector.broadcast %cst_85 : f32 to vector<16x32xf32>
    %193 = arith.select %191, %185, %192 : vector<16x32xi1>, vector<16x32xf32>
    %194 = arith.truncf %193 : vector<16x32xf32> to vector<16x32xbf16>
    %195 = arith.index_cast %152 : i32 to index
    %c0_86 = arith.constant 0 : index
    %196 = vector.load %arg10[%195, %c0_86] : memref<128x32xbf16, #tpu.memory_space<vmem>>, vector<16x32xbf16>
    tpu.vector_store %arg10[%195, %c0_86], %194 {strides = array<i32>} : memref<128x32xbf16, #tpu.memory_space<vmem>>, vector<16x32xbf16>,
    %c4_i32 = arith.constant 4 : i32
    %c16_i32_87 = arith.constant 16 : i32
    %197 = arith.muli %c4_i32, %c16_i32_87 : i32
    %198 = tpu.assume_multiple %197, 16 : i32
    %199 = arith.index_cast %198 : i32 to index
    %c0_88 = arith.constant 0 : index
    %200 = vector.load %arg9[%199, %c0_88] : memref<128x128xf32, #tpu.memory_space<vmem>>, vector<16x128xf32>
    %c0_89 = arith.constant 0 : index
    %c0_90 = arith.constant 0 : index
    %201 = vector.load %arg11[%c0_89, %c0_90] : memref<16x32xf32, #tpu.memory_space<vmem>>, vector<16x32xf32>
    %202 = arith.truncf %201 : vector<16x32xf32> to vector<16x32xbf16>
    %c0_91 = arith.constant 0 : index
    %c0_92 = arith.constant 0 : index
    %203 = vector.load %arg3[%c0_91, %c0_92] : memref<32x128xbf16, #tpu.memory_space<vmem>>, vector<32x128xbf16>
    %cst_93 = arith.constant dense<0.000000e+00> : vector<16x128xf32>
    %204 = tpu.matmul %202, %203, %cst_93 {dimension_numbers = #tpu.dot_dimension_numbers<[1], [0], [0], [1], [0, 0, 1, 1], [], []>} : vector<16x32xbf16>, vector<32x128xbf16>, vector<16x128xf32> -> vector<16x128xf32>
    %205 = arith.addf %200, %204 : vector<16x128xf32>
    %206 = vector.extract_strided_slice %205 {offsets = [0, 0], sizes = [16, 32], strides = [1, 1]} : vector<16x128xf32> to vector<16x32xf32>
    %207 = arith.negf %206 : vector<16x32xf32>
    %208 = math.exp %207 : vector<16x32xf32>
    %cst_94 = arith.constant 1.000000e+00 : f32
    %209 = vector.broadcast %cst_94 : f32 to vector<16x32xf32>
    %210 = arith.addf %209, %208 : vector<16x32xf32>
    %211 = arith.divf %209, %210 : vector<16x32xf32>
    %212 = vector.extract_strided_slice %205 {offsets = [0, 32], sizes = [16, 32], strides = [1, 1]} : vector<16x128xf32> to vector<16x32xf32>
    %213 = arith.negf %212 : vector<16x32xf32>
    %214 = math.exp %213 : vector<16x32xf32>
    %cst_95 = arith.constant 1.000000e+00 : f32
    %215 = vector.broadcast %cst_95 : f32 to vector<16x32xf32>
    %216 = arith.addf %215, %214 : vector<16x32xf32>
    %217 = arith.divf %215, %216 : vector<16x32xf32>
    %218 = vector.extract_strided_slice %205 {offsets = [0, 64], sizes = [16, 32], strides = [1, 1]} : vector<16x128xf32> to vector<16x32xf32>
    %219 = math.tanh %218 : vector<16x32xf32>
    %220 = vector.extract_strided_slice %205 {offsets = [0, 96], sizes = [16, 32], strides = [1, 1]} : vector<16x128xf32> to vector<16x32xf32>
    %221 = arith.negf %220 : vector<16x32xf32>
    %222 = math.exp %221 : vector<16x32xf32>
    %cst_96 = arith.constant 1.000000e+00 : f32
    %223 = vector.broadcast %cst_96 : f32 to vector<16x32xf32>
    %224 = arith.addf %223, %222 : vector<16x32xf32>
    %225 = arith.divf %223, %224 : vector<16x32xf32>
    %c0_97 = arith.constant 0 : index
    %c0_98 = arith.constant 0 : index
    %226 = vector.load %arg12[%c0_97, %c0_98] : memref<16x32xf32, #tpu.memory_space<vmem>>, vector<16x32xf32>
    %227 = arith.mulf %217, %226 : vector<16x32xf32>
    %228 = arith.mulf %211, %219 : vector<16x32xf32>
    %229 = arith.addf %227, %228 : vector<16x32xf32>
    %230 = math.tanh %229 : vector<16x32xf32>
    %231 = arith.mulf %225, %230 : vector<16x32xf32>
    %c0_99 = arith.constant 0 : index
    %c0_100 = arith.constant 0 : index
    %232 = vector.load %arg12[%c0_99, %c0_100] : memref<16x32xf32, #tpu.memory_space<vmem>>, vector<16x32xf32>
    tpu.vector_store %arg12[%c0_99, %c0_100], %229 {strides = array<i32>} : memref<16x32xf32, #tpu.memory_space<vmem>>, vector<16x32xf32>,
    %c0_101 = arith.constant 0 : index
    %c0_102 = arith.constant 0 : index
    %233 = vector.load %arg11[%c0_101, %c0_102] : memref<16x32xf32, #tpu.memory_space<vmem>>, vector<16x32xf32>
    tpu.vector_store %arg11[%c0_101, %c0_102], %231 {strides = array<i32>} : memref<16x32xf32, #tpu.memory_space<vmem>>, vector<16x32xf32>,
    %234 = vector.broadcast %c4_i32 : i32 to vector<16x1xi32>
    %235 = arith.cmpi sgt, %12, %234 : vector<16x1xi32>
    %cst_103 = arith.constant 0.000000e+00 : f32
    %236 = vector.shape_cast %235 : vector<16x1xi1> to vector<16x1xi1>
    %237 = vector.broadcast %236 : vector<16x1xi1> to vector<16x32xi1>
    %238 = vector.broadcast %cst_103 : f32 to vector<16x32xf32>
    %239 = arith.select %237, %231, %238 : vector<16x32xi1>, vector<16x32xf32>
    %240 = arith.truncf %239 : vector<16x32xf32> to vector<16x32xbf16>
    %241 = arith.index_cast %198 : i32 to index
    %c0_104 = arith.constant 0 : index
    %242 = vector.load %arg10[%241, %c0_104] : memref<128x32xbf16, #tpu.memory_space<vmem>>, vector<16x32xbf16>
    tpu.vector_store %arg10[%241, %c0_104], %240 {strides = array<i32>} : memref<128x32xbf16, #tpu.memory_space<vmem>>, vector<16x32xbf16>,
    %c5_i32 = arith.constant 5 : i32
    %c16_i32_105 = arith.constant 16 : i32
    %243 = arith.muli %c5_i32, %c16_i32_105 : i32
    %244 = tpu.assume_multiple %243, 16 : i32
    %245 = arith.index_cast %244 : i32 to index
    %c0_106 = arith.constant 0 : index
    %246 = vector.load %arg9[%245, %c0_106] : memref<128x128xf32, #tpu.memory_space<vmem>>, vector<16x128xf32>
    %c0_107 = arith.constant 0 : index
    %c0_108 = arith.constant 0 : index
    %247 = vector.load %arg11[%c0_107, %c0_108] : memref<16x32xf32, #tpu.memory_space<vmem>>, vector<16x32xf32>
    %248 = arith.truncf %247 : vector<16x32xf32> to vector<16x32xbf16>
    %c0_109 = arith.constant 0 : index
    %c0_110 = arith.constant 0 : index
    %249 = vector.load %arg3[%c0_109, %c0_110] : memref<32x128xbf16, #tpu.memory_space<vmem>>, vector<32x128xbf16>
    %cst_111 = arith.constant dense<0.000000e+00> : vector<16x128xf32>
    %250 = tpu.matmul %248, %249, %cst_111 {dimension_numbers = #tpu.dot_dimension_numbers<[1], [0], [0], [1], [0, 0, 1, 1], [], []>} : vector<16x32xbf16>, vector<32x128xbf16>, vector<16x128xf32> -> vector<16x128xf32>
    %251 = arith.addf %246, %250 : vector<16x128xf32>
    %252 = vector.extract_strided_slice %251 {offsets = [0, 0], sizes = [16, 32], strides = [1, 1]} : vector<16x128xf32> to vector<16x32xf32>
    %253 = arith.negf %252 : vector<16x32xf32>
    %254 = math.exp %253 : vector<16x32xf32>
    %cst_112 = arith.constant 1.000000e+00 : f32
    %255 = vector.broadcast %cst_112 : f32 to vector<16x32xf32>
    %256 = arith.addf %255, %254 : vector<16x32xf32>
    %257 = arith.divf %255, %256 : vector<16x32xf32>
    %258 = vector.extract_strided_slice %251 {offsets = [0, 32], sizes = [16, 32], strides = [1, 1]} : vector<16x128xf32> to vector<16x32xf32>
    %259 = arith.negf %258 : vector<16x32xf32>
    %260 = math.exp %259 : vector<16x32xf32>
    %cst_113 = arith.constant 1.000000e+00 : f32
    %261 = vector.broadcast %cst_113 : f32 to vector<16x32xf32>
    %262 = arith.addf %261, %260 : vector<16x32xf32>
    %263 = arith.divf %261, %262 : vector<16x32xf32>
    %264 = vector.extract_strided_slice %251 {offsets = [0, 64], sizes = [16, 32], strides = [1, 1]} : vector<16x128xf32> to vector<16x32xf32>
    %265 = math.tanh %264 : vector<16x32xf32>
    %266 = vector.extract_strided_slice %251 {offsets = [0, 96], sizes = [16, 32], strides = [1, 1]} : vector<16x128xf32> to vector<16x32xf32>
    %267 = arith.negf %266 : vector<16x32xf32>
    %268 = math.exp %267 : vector<16x32xf32>
    %cst_114 = arith.constant 1.000000e+00 : f32
    %269 = vector.broadcast %cst_114 : f32 to vector<16x32xf32>
    %270 = arith.addf %269, %268 : vector<16x32xf32>
    %271 = arith.divf %269, %270 : vector<16x32xf32>
    %c0_115 = arith.constant 0 : index
    %c0_116 = arith.constant 0 : index
    %272 = vector.load %arg12[%c0_115, %c0_116] : memref<16x32xf32, #tpu.memory_space<vmem>>, vector<16x32xf32>
    %273 = arith.mulf %263, %272 : vector<16x32xf32>
    %274 = arith.mulf %257, %265 : vector<16x32xf32>
    %275 = arith.addf %273, %274 : vector<16x32xf32>
    %276 = math.tanh %275 : vector<16x32xf32>
    %277 = arith.mulf %271, %276 : vector<16x32xf32>
    %c0_117 = arith.constant 0 : index
    %c0_118 = arith.constant 0 : index
    %278 = vector.load %arg12[%c0_117, %c0_118] : memref<16x32xf32, #tpu.memory_space<vmem>>, vector<16x32xf32>
    tpu.vector_store %arg12[%c0_117, %c0_118], %275 {strides = array<i32>} : memref<16x32xf32, #tpu.memory_space<vmem>>, vector<16x32xf32>,
    %c0_119 = arith.constant 0 : index
    %c0_120 = arith.constant 0 : index
    %279 = vector.load %arg11[%c0_119, %c0_120] : memref<16x32xf32, #tpu.memory_space<vmem>>, vector<16x32xf32>
    tpu.vector_store %arg11[%c0_119, %c0_120], %277 {strides = array<i32>} : memref<16x32xf32, #tpu.memory_space<vmem>>, vector<16x32xf32>,
    %280 = vector.broadcast %c5_i32 : i32 to vector<16x1xi32>
    %281 = arith.cmpi sgt, %12, %280 : vector<16x1xi32>
    %cst_121 = arith.constant 0.000000e+00 : f32
    %282 = vector.shape_cast %281 : vector<16x1xi1> to vector<16x1xi1>
    %283 = vector.broadcast %282 : vector<16x1xi1> to vector<16x32xi1>
    %284 = vector.broadcast %cst_121 : f32 to vector<16x32xf32>
    %285 = arith.select %283, %277, %284 : vector<16x32xi1>, vector<16x32xf32>
    %286 = arith.truncf %285 : vector<16x32xf32> to vector<16x32xbf16>
    %287 = arith.index_cast %244 : i32 to index
    %c0_122 = arith.constant 0 : index
    %288 = vector.load %arg10[%287, %c0_122] : memref<128x32xbf16, #tpu.memory_space<vmem>>, vector<16x32xbf16>
    tpu.vector_store %arg10[%287, %c0_122], %286 {strides = array<i32>} : memref<128x32xbf16, #tpu.memory_space<vmem>>, vector<16x32xbf16>,
    %c6_i32 = arith.constant 6 : i32
    %c16_i32_123 = arith.constant 16 : i32
    %289 = arith.muli %c6_i32, %c16_i32_123 : i32
    %290 = tpu.assume_multiple %289, 16 : i32
    %291 = arith.index_cast %290 : i32 to index
    %c0_124 = arith.constant 0 : index
    %292 = vector.load %arg9[%291, %c0_124] : memref<128x128xf32, #tpu.memory_space<vmem>>, vector<16x128xf32>
    %c0_125 = arith.constant 0 : index
    %c0_126 = arith.constant 0 : index
    %293 = vector.load %arg11[%c0_125, %c0_126] : memref<16x32xf32, #tpu.memory_space<vmem>>, vector<16x32xf32>
    %294 = arith.truncf %293 : vector<16x32xf32> to vector<16x32xbf16>
    %c0_127 = arith.constant 0 : index
    %c0_128 = arith.constant 0 : index
    %295 = vector.load %arg3[%c0_127, %c0_128] : memref<32x128xbf16, #tpu.memory_space<vmem>>, vector<32x128xbf16>
    %cst_129 = arith.constant dense<0.000000e+00> : vector<16x128xf32>
    %296 = tpu.matmul %294, %295, %cst_129 {dimension_numbers = #tpu.dot_dimension_numbers<[1], [0], [0], [1], [0, 0, 1, 1], [], []>} : vector<16x32xbf16>, vector<32x128xbf16>, vector<16x128xf32> -> vector<16x128xf32>
    %297 = arith.addf %292, %296 : vector<16x128xf32>
    %298 = vector.extract_strided_slice %297 {offsets = [0, 0], sizes = [16, 32], strides = [1, 1]} : vector<16x128xf32> to vector<16x32xf32>
    %299 = arith.negf %298 : vector<16x32xf32>
    %300 = math.exp %299 : vector<16x32xf32>
    %cst_130 = arith.constant 1.000000e+00 : f32
    %301 = vector.broadcast %cst_130 : f32 to vector<16x32xf32>
    %302 = arith.addf %301, %300 : vector<16x32xf32>
    %303 = arith.divf %301, %302 : vector<16x32xf32>
    %304 = vector.extract_strided_slice %297 {offsets = [0, 32], sizes = [16, 32], strides = [1, 1]} : vector<16x128xf32> to vector<16x32xf32>
    %305 = arith.negf %304 : vector<16x32xf32>
    %306 = math.exp %305 : vector<16x32xf32>
    %cst_131 = arith.constant 1.000000e+00 : f32
    %307 = vector.broadcast %cst_131 : f32 to vector<16x32xf32>
    %308 = arith.addf %307, %306 : vector<16x32xf32>
    %309 = arith.divf %307, %308 : vector<16x32xf32>
    %310 = vector.extract_strided_slice %297 {offsets = [0, 64], sizes = [16, 32], strides = [1, 1]} : vector<16x128xf32> to vector<16x32xf32>
    %311 = math.tanh %310 : vector<16x32xf32>
    %312 = vector.extract_strided_slice %297 {offsets = [0, 96], sizes = [16, 32], strides = [1, 1]} : vector<16x128xf32> to vector<16x32xf32>
    %313 = arith.negf %312 : vector<16x32xf32>
    %314 = math.exp %313 : vector<16x32xf32>
    %cst_132 = arith.constant 1.000000e+00 : f32
    %315 = vector.broadcast %cst_132 : f32 to vector<16x32xf32>
    %316 = arith.addf %315, %314 : vector<16x32xf32>
    %317 = arith.divf %315, %316 : vector<16x32xf32>
    %c0_133 = arith.constant 0 : index
    %c0_134 = arith.constant 0 : index
    %318 = vector.load %arg12[%c0_133, %c0_134] : memref<16x32xf32, #tpu.memory_space<vmem>>, vector<16x32xf32>
    %319 = arith.mulf %309, %318 : vector<16x32xf32>
    %320 = arith.mulf %303, %311 : vector<16x32xf32>
    %321 = arith.addf %319, %320 : vector<16x32xf32>
    %322 = math.tanh %321 : vector<16x32xf32>
    %323 = arith.mulf %317, %322 : vector<16x32xf32>
    %c0_135 = arith.constant 0 : index
    %c0_136 = arith.constant 0 : index
    %324 = vector.load %arg12[%c0_135, %c0_136] : memref<16x32xf32, #tpu.memory_space<vmem>>, vector<16x32xf32>
    tpu.vector_store %arg12[%c0_135, %c0_136], %321 {strides = array<i32>} : memref<16x32xf32, #tpu.memory_space<vmem>>, vector<16x32xf32>,
    %c0_137 = arith.constant 0 : index
    %c0_138 = arith.constant 0 : index
    %325 = vector.load %arg11[%c0_137, %c0_138] : memref<16x32xf32, #tpu.memory_space<vmem>>, vector<16x32xf32>
    tpu.vector_store %arg11[%c0_137, %c0_138], %323 {strides = array<i32>} : memref<16x32xf32, #tpu.memory_space<vmem>>, vector<16x32xf32>,
    %326 = vector.broadcast %c6_i32 : i32 to vector<16x1xi32>
    %327 = arith.cmpi sgt, %12, %326 : vector<16x1xi32>
    %cst_139 = arith.constant 0.000000e+00 : f32
    %328 = vector.shape_cast %327 : vector<16x1xi1> to vector<16x1xi1>
    %329 = vector.broadcast %328 : vector<16x1xi1> to vector<16x32xi1>
    %330 = vector.broadcast %cst_139 : f32 to vector<16x32xf32>
    %331 = arith.select %329, %323, %330 : vector<16x32xi1>, vector<16x32xf32>
    %332 = arith.truncf %331 : vector<16x32xf32> to vector<16x32xbf16>
    %333 = arith.index_cast %290 : i32 to index
    %c0_140 = arith.constant 0 : index
    %334 = vector.load %arg10[%333, %c0_140] : memref<128x32xbf16, #tpu.memory_space<vmem>>, vector<16x32xbf16>
    tpu.vector_store %arg10[%333, %c0_140], %332 {strides = array<i32>} : memref<128x32xbf16, #tpu.memory_space<vmem>>, vector<16x32xbf16>,
    %c7_i32 = arith.constant 7 : i32
    %c16_i32_141 = arith.constant 16 : i32
    %335 = arith.muli %c7_i32, %c16_i32_141 : i32
    %336 = tpu.assume_multiple %335, 16 : i32
    %337 = arith.index_cast %336 : i32 to index
    %c0_142 = arith.constant 0 : index
    %338 = vector.load %arg9[%337, %c0_142] : memref<128x128xf32, #tpu.memory_space<vmem>>, vector<16x128xf32>
    %c0_143 = arith.constant 0 : index
    %c0_144 = arith.constant 0 : index
    %339 = vector.load %arg11[%c0_143, %c0_144] : memref<16x32xf32, #tpu.memory_space<vmem>>, vector<16x32xf32>
    %340 = arith.truncf %339 : vector<16x32xf32> to vector<16x32xbf16>
    %c0_145 = arith.constant 0 : index
    %c0_146 = arith.constant 0 : index
    %341 = vector.load %arg3[%c0_145, %c0_146] : memref<32x128xbf16, #tpu.memory_space<vmem>>, vector<32x128xbf16>
    %cst_147 = arith.constant dense<0.000000e+00> : vector<16x128xf32>
    %342 = tpu.matmul %340, %341, %cst_147 {dimension_numbers = #tpu.dot_dimension_numbers<[1], [0], [0], [1], [0, 0, 1, 1], [], []>} : vector<16x32xbf16>, vector<32x128xbf16>, vector<16x128xf32> -> vector<16x128xf32>
    %343 = arith.addf %338, %342 : vector<16x128xf32>
    %344 = vector.extract_strided_slice %343 {offsets = [0, 0], sizes = [16, 32], strides = [1, 1]} : vector<16x128xf32> to vector<16x32xf32>
    %345 = arith.negf %344 : vector<16x32xf32>
    %346 = math.exp %345 : vector<16x32xf32>
    %cst_148 = arith.constant 1.000000e+00 : f32
    %347 = vector.broadcast %cst_148 : f32 to vector<16x32xf32>
    %348 = arith.addf %347, %346 : vector<16x32xf32>
    %349 = arith.divf %347, %348 : vector<16x32xf32>
    %350 = vector.extract_strided_slice %343 {offsets = [0, 32], sizes = [16, 32], strides = [1, 1]} : vector<16x128xf32> to vector<16x32xf32>
    %351 = arith.negf %350 : vector<16x32xf32>
    %352 = math.exp %351 : vector<16x32xf32>
    %cst_149 = arith.constant 1.000000e+00 : f32
    %353 = vector.broadcast %cst_149 : f32 to vector<16x32xf32>
    %354 = arith.addf %353, %352 : vector<16x32xf32>
    %355 = arith.divf %353, %354 : vector<16x32xf32>
    %356 = vector.extract_strided_slice %343 {offsets = [0, 64], sizes = [16, 32], strides = [1, 1]} : vector<16x128xf32> to vector<16x32xf32>
    %357 = math.tanh %356 : vector<16x32xf32>
    %358 = vector.extract_strided_slice %343 {offsets = [0, 96], sizes = [16, 32], strides = [1, 1]} : vector<16x128xf32> to vector<16x32xf32>
    %359 = arith.negf %358 : vector<16x32xf32>
    %360 = math.exp %359 : vector<16x32xf32>
    %cst_150 = arith.constant 1.000000e+00 : f32
    %361 = vector.broadcast %cst_150 : f32 to vector<16x32xf32>
    %362 = arith.addf %361, %360 : vector<16x32xf32>
    %363 = arith.divf %361, %362 : vector<16x32xf32>
    %c0_151 = arith.constant 0 : index
    %c0_152 = arith.constant 0 : index
    %364 = vector.load %arg12[%c0_151, %c0_152] : memref<16x32xf32, #tpu.memory_space<vmem>>, vector<16x32xf32>
    %365 = arith.mulf %355, %364 : vector<16x32xf32>
    %366 = arith.mulf %349, %357 : vector<16x32xf32>
    %367 = arith.addf %365, %366 : vector<16x32xf32>
    %368 = math.tanh %367 : vector<16x32xf32>
    %369 = arith.mulf %363, %368 : vector<16x32xf32>
    %c0_153 = arith.constant 0 : index
    %c0_154 = arith.constant 0 : index
    %370 = vector.load %arg12[%c0_153, %c0_154] : memref<16x32xf32, #tpu.memory_space<vmem>>, vector<16x32xf32>
    tpu.vector_store %arg12[%c0_153, %c0_154], %367 {strides = array<i32>} : memref<16x32xf32, #tpu.memory_space<vmem>>, vector<16x32xf32>,
    %c0_155 = arith.constant 0 : index
    %c0_156 = arith.constant 0 : index
    %371 = vector.load %arg11[%c0_155, %c0_156] : memref<16x32xf32, #tpu.memory_space<vmem>>, vector<16x32xf32>
    tpu.vector_store %arg11[%c0_155, %c0_156], %369 {strides = array<i32>} : memref<16x32xf32, #tpu.memory_space<vmem>>, vector<16x32xf32>,
    %372 = vector.broadcast %c7_i32 : i32 to vector<16x1xi32>
    %373 = arith.cmpi sgt, %12, %372 : vector<16x1xi32>
    %cst_157 = arith.constant 0.000000e+00 : f32
    %374 = vector.shape_cast %373 : vector<16x1xi1> to vector<16x1xi1>
    %375 = vector.broadcast %374 : vector<16x1xi1> to vector<16x32xi1>
    %376 = vector.broadcast %cst_157 : f32 to vector<16x32xf32>
    %377 = arith.select %375, %369, %376 : vector<16x32xi1>, vector<16x32xf32>
    %378 = arith.truncf %377 : vector<16x32xf32> to vector<16x32xbf16>
    %379 = arith.index_cast %336 : i32 to index
    %c0_158 = arith.constant 0 : index
    %380 = vector.load %arg10[%379, %c0_158] : memref<128x32xbf16, #tpu.memory_space<vmem>>, vector<16x32xbf16>
    tpu.vector_store %arg10[%379, %c0_158], %378 {strides = array<i32>} : memref<128x32xbf16, #tpu.memory_space<vmem>>, vector<16x32xbf16>,
    %c8_i32 = arith.constant 8 : i32
    %c0_159 = arith.constant 0 : index
    %c0_160 = arith.constant 0 : index
    %381 = vector.load %arg10[%c0_159, %c0_160] : memref<128x32xbf16, #tpu.memory_space<vmem>>, vector<128x32xbf16>
    %c0_161 = arith.constant 0 : index
    %c0_162 = arith.constant 0 : index
    %382 = vector.load %arg5[%c0_161, %c0_162] : memref<32x128xbf16, #tpu.memory_space<vmem>>, vector<32x128xbf16>
    %cst_163 = arith.constant dense<0.000000e+00> : vector<128x128xf32>
    %383 = tpu.matmul %381, %382, %cst_163 {dimension_numbers = #tpu.dot_dimension_numbers<[1], [0], [0], [1], [0, 0, 1, 1], [], []>} : vector<128x32xbf16>, vector<32x128xbf16>, vector<128x128xf32> -> vector<128x128xf32>
    %c0_164 = arith.constant 0 : index
    %c0_165 = arith.constant 0 : index
    %384 = vector.load %arg6[%c0_164, %c0_165] : memref<1x128xf32, #tpu.memory_space<vmem>>, vector<1x128xf32>
    %385 = vector.broadcast %384 : vector<1x128xf32> to vector<128x128xf32>
    %386 = arith.addf %383, %385 : vector<128x128xf32>
    %387 = vector.shape_cast %386 : vector<128x128xf32> to vector<8x16x128xf32>
    %c0_166 = arith.constant 0 : index
    %c0_167 = arith.constant 0 : index
    %c0_168 = arith.constant 0 : index
    %388 = vector.load %arg8[%c0_166, %c0_167, %c0_168] : memref<8x16x128xf32, #tpu.memory_space<vmem>>, vector<8x16x128xf32>
    tpu.vector_store %arg8[%c0_166, %c0_167, %c0_168], %387 {strides = array<i32>} : memref<8x16x128xf32, #tpu.memory_space<vmem>>, vector<8x16x128xf32>,
    return
  }
  func.func @transform_0(%arg0: i32) -> (i32, i32, i32) {
    %c0_i32 = arith.constant 0 : i32
    %c0_i32_0 = arith.constant 0 : i32
    %c0_i32_1 = arith.constant 0 : i32
    return %c0_i32, %arg0, %c0_i32_0 : i32, i32, i32
  }
  func.func @transform_1(%arg0: i32) -> (i32, i32) {
    %c0_i32 = arith.constant 0 : i32
    %c0_i32_0 = arith.constant 0 : i32
    %c0_i32_1 = arith.constant 0 : i32
    return %c0_i32, %c0_i32_0 : i32, i32
  }
  func.func @transform_2(%arg0: i32) -> (i32, i32) {
    %c0_i32 = arith.constant 0 : i32
    %c0_i32_0 = arith.constant 0 : i32
    %c0_i32_1 = arith.constant 0 : i32
    return %c0_i32, %c0_i32_0 : i32, i32
  }
  func.func @transform_3(%arg0: i32) -> (i32, i32) {
    %c0_i32 = arith.constant 0 : i32
    %c0_i32_0 = arith.constant 0 : i32
    %c0_i32_1 = arith.constant 0 : i32
    return %c0_i32, %c0_i32_0 : i32, i32
  }
  func.func @transform_4(%arg0: i32) -> (i32, i32) {
    %c0_i32 = arith.constant 0 : i32
    %c0_i32_0 = arith.constant 0 : i32
    %c0_i32_1 = arith.constant 0 : i32
    return %c0_i32, %c0_i32_0 : i32, i32
  }
  func.func @transform_5(%arg0: i32) -> (i32, i32) {
    %c0_i32 = arith.constant 0 : i32
    %c0_i32_0 = arith.constant 0 : i32
    %c0_i32_1 = arith.constant 0 : i32
    return %c0_i32, %c0_i32_0 : i32, i32
  }
  func.func @transform_6(%arg0: i32) -> (i32, i32) {
    %c0_i32 = arith.constant 0 : i32
    %c0_i32_0 = arith.constant 0 : i32
    return %arg0, %c0_i32 : i32, i32
  }
  func.func @transform_7(%arg0: i32) -> (i32, i32, i32) {
    %c0_i32 = arith.constant 0 : i32
    %c0_i32_0 = arith.constant 0 : i32
    %c0_i32_1 = arith.constant 0 : i32
    return %c0_i32, %arg0, %c0_i32_0 : i32, i32, i32
  }
}

</mosaic_0001>

<bundles_post_ra>
// kernel: tpu_custom_call.1
= control target key start
LH: loop header
LB: loop body
LE: loop exit
PB: predicated region body
PF: predicated region fallthrough
CT: control target
= control target key end

     0   :  { %12 = vsyncpa [#allocation7], 0  ;;  %s2783_s0 = inlined_call_operand.hbm [shape: bf16[8,16,32], index: 0, kind: input, shape index: {}]   ;;  %s2784_s1 = inlined_call_operand.vmem [shape: bf16[32,128], index: 1, kind: input, shape index: {}]   ;;  %s2785_s2 = inlined_call_operand.hbm [shape: bf16[32,128], index: 2, kind: input, shape index: {}]   ;;  %s2786_s3 = inlined_call_operand.hbm [shape: f32[1,128], index: 3, kind: input, shape index: {}]   ;;  %s2787_s4 = inlined_call_operand.vmem [shape: bf16[32,128], index: 4, kind: input, shape index: {}]   ;;  %s2788_s5 = inlined_call_operand.vmem [shape: f32[1,128], index: 5, kind: input, shape index: {}]   ;;  %s2789_s6 = inlined_call_operand.vmem [shape: s32[16,1], index: 6, kind: input, shape index: {}]   ;;  %s2790_s7 = inlined_call_operand.hbm [shape: f32[8,16,128], index: 7, kind: output, shape index: {}]  }
   0x1   :  { %13 = vsyncpa [#allocation10], 0 }
   0x2   :  { %14 = vsyncpa [#allocation8], 0  ;;  %s2298_s24 = smov [#allocation9]   ;;  %s2299_s26 = smov [#allocation6]  }
   0x3   :  { %s34_s25 = sshll.u32 %s2298_s24, 4  ;;  %s20_s27 = sshll.u32 %s2299_s26, 4  ;;  %s35_s25 = int_to_ptr.vmem [resolvable:$true] %s34_s25  ;;  %s2351_s27 = int_to_ptr.vmem [resolvable:$true] %s20_s27 }
   0x4   :  { %s2204_s30 = scalar_lea.hbm %s2785_s2, 256 }
   0x5   :  { %p2205_p0 = scmp.ne.s32.totalorder %s2785_s2, %s2204_s30  ;;  %p2208_p1 = scmp.lt.u32.totalorder %s2204_s30, %s2785_s2 }
   0x7   :  { %p2210_p2 = pnand %p2208_p1, %p2205_p0 }
   0x9   :  { %2213 = shalt.err (!%p2210_p2)
}
   0xa   :  { %s2214_s12 = scalar_lea.vmem %s35_s25, 256  ;;  %p2219_p4 = scmp.lt.s32.totalorder %s35_s25, %s35_s25 }
   0xb   :  { %p2215_p3 = scmp.ne.s32.totalorder %s35_s25, %s2214_s12  ;;  %p2220_p5 = scmp.lt.s32.totalorder %s2214_s12, %s2214_s12 }
   0xd   :  { %p2221_p6 = por %p2220_p5, %p2219_p4 }
   0xf   :  { %p2222_p7 = pnand %p2221_p6, %p2215_p3 }
  0x11   :  { %2225 = shalt.err (!%p2222_p7)
}
  0x12   :  { %s2300_s13 = smov 64   ;;  %s2301_s14 = smov 4  }
  0x13   :  { %40 = dma.hbm_to_vmem [thread:$0]  %s2785_s2, 256, %s35_s25, [#allocation10], %s2300_s13, %s2300_s13, %s2301_s14  }
  0x14   :  { %s2226_s19 = scalar_lea.hbm %s2783_s0, 1024 }
  0x15   :  { %p2227_p8 = scmp.ne.s32.totalorder %s2783_s0, %s2226_s19  ;;  %p2230_p9 = scmp.lt.u32.totalorder %s2226_s19, %s2783_s0 }
  0x17   :  { %p2232_p10 = pnand %p2230_p9, %p2227_p8 }
  0x19   :  { %2235 = shalt.err (!%p2232_p10)
}
  0x1a   :  { %s2236_s24 = scalar_lea.vmem %s2351_s27, 1024  ;;  %p2241_p12 = scmp.lt.s32.totalorder %s2351_s27, %s2351_s27 }
  0x1b   :  { %p2237_p11 = scmp.ne.s32.totalorder %s2351_s27, %s2236_s24  ;;  %p2242_p13 = scmp.lt.s32.totalorder %s2236_s24, %s2236_s24 }
  0x1d   :  { %p2243_p0 = por %p2242_p13, %p2241_p12 }
  0x1f   :  { %p2244_p1 = pnand %p2243_p0, %p2237_p11 }
  0x21   :  { %2247 = shalt.err (!%p2244_p1)
}
  0x22   :  { %26 = dma.hbm_to_vmem [thread:$0]  %s2783_s0, 1024, %s2351_s27, [#allocation7], %s2300_s13, %s2300_s13, %s2301_s14  }
  0x23   :  { %s2302_s26 = smov [#allocation11]   ;;  %s2248_s8 = scalar_lea.hbm %s2786_s3, 16 }
  0x24   :  { %s47_s28 = sshll.u32 %s2302_s26, 4  ;;  %p2249_p2 = scmp.ne.s32.totalorder %s2786_s3, %s2248_s8  ;;  %s48_s28 = int_to_ptr.vmem [resolvable:$true] %s47_s28 }
  0x25   :  { %p2252_p3 = scmp.lt.u32.totalorder %s2248_s8, %s2786_s3 }
  0x27   :  { %p2254_p4 = pnand %p2252_p3, %p2249_p2 }
  0x29   :  { %2257 = shalt.err (!%p2254_p4)
}
  0x2a   :  { %s2258_s15 = scalar_lea.vmem %s48_s28, 16  ;;  %s2262_s0 = scalar_lea.vmem %s48_s28, 32 }
  0x2b   :  { %p2259_p5 = scmp.ne.s32.totalorder %s48_s28, %s2258_s15  ;;  %p2263_p6 = scmp.lt.s32.totalorder %s48_s28, %s48_s28 }
  0x2c   :  { %p2264_p7 = scmp.lt.s32.totalorder %s2262_s0, %s2258_s15 }
  0x2e   :  { %p2265_p8 = por %p2264_p7, %p2263_p6 }
  0x30   :  { %p2266_p9 = pnand %p2265_p8, %p2259_p5 }
  0x32   :  { %2269 = shalt.err (!%p2266_p9)
}
  0x33   :  { %50 = dma.hbm_to_vmem [thread:$0]  %s2786_s3, 16, %s48_s28, [#allocation10]  }
  0x34   :  { %2292 = dma.done.wait [#allocation7], 1024  }
  0x35   :  { %2293 = vsyncadd [#allocation7], 4294966272 }
  0x36   :  { %2294 = dma.done.wait [#allocation10], 272  }
  0x37   :  { %2295 = vsyncadd [#allocation10], 4294967024  ;;  %vm146_vm0 = vcmask 261120   ;;  %v2303_v0 = vmov 0.0   ;;  %v2047_v1 = vld [vmem:[%s2784_s1] sm:$0xff]   ;;  %v2048_v2 = vld [vmem:[%s2784_s1 + $0x8] sm:$0xff]  }
  0x38   :  { %284 = vst.msk [vmem:[#allocation4] sm:$0xff] %vm146_vm0, %v2303_v0  ;;  %285 = vst.msk [vmem:[#allocation4 + $0x8] sm:$0xff] %vm146_vm0, %v2303_v0  ;;  %2028 = vmatprep.subr.bf16.mxu1 %v2047_v1  ;;  %v2049_v3 = vld [vmem:[#allocation6 + $0x20] sm:$0xff]   ;;  %1924 = vmatprep.subr.bf16.mxu0 %v2047_v1  ;;  %v2050_v4 = vld [vmem:[#allocation6 + $0x28] sm:$0xff]   ;;  %s2304_s1 = smov 32   ;;  %vm2305_vm1 = vmmov 0  }
  0x39   :  { %286 = vst.msk [vmem:[#allocation5] sm:$0xff] %vm146_vm0, %v2303_v0  ;;  %287 = vst.msk [vmem:[#allocation5 + $0x8] sm:$0xff] %vm146_vm0, %v2303_v0  ;;  %2030 = vmatpush3.bf16.msra.mxu1 %v2047_v1  ;;  %1925 = vmatpush3.bf16.msra.mxu0 %v2047_v1  ;;  %v2051_v5 = vld [vmem:[#allocation9] sm:$0xff]   ;;  %v2052_v6 = vld [vmem:[#allocation6 + $0x30] sm:$0xff]   ;;  %s2306_s19 = smov 96  }
  0x3a   :  { %2029 = vmatprep.subr.bf16.mxu1 %v2048_v2  ;;  %1936 = vmatprep.mubr.msk.bf16.mxu1 %vm146_vm0, %v2049_v3  ;;  %v2055_v7 = vld [vmem:[#allocation6] sm:$0xff]   ;;  %v2056_v8 = vld [vmem:[#allocation6 + $0x8] sm:$0xff]   ;;  %v2053_v11 = vld [vmem:[#allocation6 + $0x38] sm:$0xff]  }
  0x3b   :  { %1926 = vmatprep.subr.bf16.mxu0 %v2048_v2  ;;  %1928 = vmatprep.mubr.msk.bf16.mxu0 %vm146_vm0, %v2055_v7  ;;  %v2054_v10 = vld [vmem:[#allocation9 + $0x8] sm:$0xff]   ;;  %v2449_v28 = vld [vmem:[#allocation11] ss:$0 sm:$0xff]  ;;  %v2057_v61 = vld [vmem:[#allocation9] sm:$0xff]  }
  0x3c   :  { %v2058_v62 = vld [vmem:[#allocation9 + $0x8] sm:$0xff]  }
  0x3d   :  { %2031 = vmatpush3.bf16.msra.mxu1 %v2048_v2  ;;  %1927 = vmatpush3.bf16.msra.mxu0 %v2048_v2 }
  0x3e   :  { %1944 = vmatprep.subr.bf16.mxu1 %v2303_v0  ;;  %1976 = vmatprep.subr.bf16.mxu0 %v2303_v0 }
  0x3f   :  { %v292_v13 = vld [vmem:[#allocation4] sm:$0xff]  ;;  %v293_v14 = vld [vmem:[#allocation4 + $0x8] sm:$0xff] }
  0x40   :  { %1937 = vmatmul.mubr.msk.bf16.vlgmr.msra.gmra.mrb[0].mxu1 %vm146_vm0, %v2050_v4  ;;  %v371_v9 = vld [vmem:[#allocation5] sm:$0xff]  ;;  %1929 = vmatmul.mubr.msk.bf16.vlgmr.msra.gmra.mrb[0].mxu0 %vm146_vm0, %v2056_v8  ;;  %v372_v12 = vld [vmem:[#allocation5 + $0x8] sm:$0xff]  ;;  %v294_v15 = vpack.c.bf16 %v293_v14, %v292_v13 }
  0x41   :  { %1945 = vmatpush3.bf16.msra.mxu1 %v2051_v5  ;;  %1940 = vmatprep.mubr.msk.bf16.mxu1 %vm146_vm0, %v2052_v6 }
  0x42   :  { %1946 = vmatprep.subr.bf16.mxu1 %v2303_v0  ;;  %375 = vrot.lane.b32.xlu1 %v371_v9, %s2304_s1 }
  0x45   :  { %1947 = vmatpush3.bf16.msra.mxu1 %v2054_v10 }
  0x46   :  { %1952 = vmatprep.subr.bf16.mxu1 %v2303_v0  ;;  %377 = vrot.lane.b32.xlu1 %v372_v12, %s2304_s1 }
  0x48   :  { %1941 = vmatmul.mubr.msk.bf16.gmra.mrb[4].mxu1 %vm146_vm0, %v2053_v11 }
  0x49   :  { %1948 = vmatprep.mubr.msk.bf16.mxu1 %vm2305_vm1, %v2303_v0 }
  0x50   :  { %1949 = vmatmul.mubr.msk.bf16.vlgmr.msra.gmra.mrb[8].mxu1 %vm146_vm0, %v294_v15 }
  0x51   :  { %1956 = vmatprep.mubr.msk.bf16.mxu1 %vm2305_vm1, %v2303_v0  ;;  %1953 = vmatpush3.bf16.msra.mxu1 %v2057_v61 }
  0x52   :  { %1954 = vmatprep.subr.bf16.mxu1 %v2303_v0 }
  0x55   :  { %1955 = vmatpush3.bf16.msra.mxu1 %v2058_v62 }
  0x56   :  { %1960 = vmatprep.subr.bf16.mxu1 %v2303_v0 }
  0xb4   :  { %v376_v51 = vpop.permute.xlu1 %375 }
  0xb8   :  { %v378_v53 = vpop.permute.xlu1 %377 }
 0x113   :  { %v2429_v16 = vpop.f32.mrb[0].mxu1  ;;  %v2435_v19 = vpop.f32.mrb[0].mxu0 }
 0x114   :  { %v2431_v17 = vpop.f32.mrb[1].mxu1  ;;  %v205_v21 = vpop.f32.mrb[1].mxu0  ;;  %v214_v11 = vadd.f32 %v2435_v19, %v2449_v28 }
 0x115   :  { %v2433_v18 = vpop.f32.mrb[2].mxu1  ;;  %v2439_v22 = vpop.f32.mrb[2].mxu0  ;;  %v206_v29 = vadd.f32 %v2449_v28, %v205_v21 }
 0x116   :  { %v2437_v20 = vpop.f32.mrb[3].mxu1  ;;  %v208_v23 = vpop.f32.mrb[3].mxu0  ;;  %v217_v13 = vadd.f32 %v2439_v22, %v2449_v28 }
 0x117   :  { %v209_v31 = vadd.f32 %v2449_v28, %v208_v23 }
 0x11b   :  { %v2441_v24 = vpop.f32.mrb[4].mxu1 }
 0x11c   :  { %v2443_v25 = vpop.f32.mrb[5].mxu1 }
 0x11d   :  { %v2445_v26 = vpop.f32.mrb[6].mxu1 }
 0x11e   :  { %v2447_v27 = vpop.f32.mrb[7].mxu1 }
 0x123   :  { %v348_v30 = vpop.f32.mrb[8].mxu1 }
 0x124   :  { %v355_v32 = vadd.f32 %v348_v30, %v206_v29  ;;  %v1950_v33 = vpop.f32.mrb[9].mxu1 }
 0x125   :  { %v351_v34 = vpop.f32.mrb[10].mxu1 }
 0x126   :  { %v356_v35 = vadd.f32 %v351_v34, %v209_v31  ;;  %v1951_v36 = vpop.f32.mrb[11].mxu1  ;;  %2075 = vtanh.f32 %v355_v32  ;;  %v1832_v39 = vmul.f32 -1.442695, %v355_v32 }
 0x128   :  { %2077 = vtanh.f32 %v356_v35  ;;  %v1833_v40 = vmul.f32 -1.442695, %v356_v35 }
 0x129   :  { %2079 = vpow2.f32 %v1832_v39 }
 0x12a   :  { %2081 = vpow2.f32 %v1833_v40 }
 0x130   :  { %v2076_v37 = vpop.eup %2075 }
 0x131   :  { %385 = vrot.lane.b32.xlu0 %v2076_v37, %s2300_s13 }
 0x132   :  { %v2078_v38 = vpop.eup %2077 }
 0x133   :  { %v2080_v41 = vpop.eup %2079 }
 0x134   :  { %v363_v42 = vadd.f32 1.0, %v2080_v41  ;;  %v2082_v43 = vpop.eup %2081 }
 0x135   :  { %387 = vrot.lane.b32.xlu0 %v2078_v38, %s2300_s13  ;;  %v364_v44 = vadd.f32 1.0, %v2082_v43 }
 0x136   :  { %2083 = vrcp.f32 %v363_v42 }
 0x137   :  { %2085 = vrcp.f32 %v364_v44 }
 0x140   :  { %v2084_v45 = vpop.eup %2083 }
 0x141   :  { %v2086_v48 = vpop.eup %2085  ;;  %v381_v52 = vmul.f32 %v2084_v45, %v376_v51 }
 0x142   :  { %v382_v56 = vmul.f32 %v2086_v48, %v378_v53 }
 0x1a3   :  { %v386_v46 = vpop.permute.xlu0 %385 }
 0x1a4   :  { %v391_v47 = vmul.f32 %v2084_v45, %v386_v46 }
 0x1a6   :  { %395 = vrot.lane.b32.xlu0 %v391_v47, %s2304_s1 }
 0x1a7   :  { %v388_v49 = vpop.permute.xlu0 %387 }
 0x1a8   :  { %v392_v50 = vmul.f32 %v2086_v48, %v388_v49 }
 0x1aa   :  { %397 = vrot.lane.b32.xlu1 %v392_v50, %s2304_s1 }
 0x218   :  { %v396_v54 = vpop.permute.xlu0 %395 }
 0x219   :  { %v401_v55 = vadd.f32 %v396_v54, %v381_v52  ;;  %v2059_v54 = vld [vmem:[#allocation9] sm:$0xff]  }
 0x21b   :  { %2087 = vtanh.f32 %v401_v55 }
 0x21c   :  { %v398_v57 = vpop.permute.xlu1 %397 }
 0x21d   :  { %v402_v58 = vadd.f32 %v398_v57, %v382_v56  ;;  %v2061_v56 = vld [vmem:[#allocation6 + $0x18] sm:$0xff]   ;;  %v2062_v57 = vld [vmem:[#allocation9 + $0x8] sm:$0xff]  }
 0x21f   :  { %2089 = vtanh.f32 %v402_v58 }
 0x225   :  { %v2088_v59 = vpop.eup %2087 }
 0x226   :  { %407 = vrot.lane.b32.xlu0 %v2088_v59, %s2300_s13 }
 0x229   :  { %v2090_v60 = vpop.eup %2089 }
 0x22a   :  { %409 = vrot.lane.b32.xlu1 %v2090_v60, %s2300_s13 }
 0x298   :  { %v408_v63 = vpop.permute.xlu0 %407 }
 0x299   :  { %v2460_v1 = vmul.f32 %v2084_v45, %v408_v63 }
 0x29b   :  { %427 = vrot.lane.b32.xlu0 %v2460_v1, %s2304_s1 }
 0x29c   :  { %v410_v2 = vpop.permute.xlu1 %409 }
 0x29d   :  { %v2465_v3 = vmul.f32 %v2086_v48, %v410_v2 }
 0x29f   :  { %429 = vrot.lane.b32.xlu1 %v2465_v3, %s2304_s1  ;;  %417 = vrot.lane.b32.xlu0 %v401_v55, %s2306_s19  ;;  %v2060_v55 = vld [vmem:[#allocation6 + $0x10] sm:$0xff]  }
 0x2a0   :  { %1932 = vmatprep.mubr.msk.bf16.mxu0 %vm146_vm0, %v2060_v55  ;;  %v2063_v55 = vld [vmem:[#allocation9] sm:$0xff]  }
 0x2a1   :  { %1933 = vmatmul.mubr.msk.bf16.gmra.mrb[4].mxu0 %vm146_vm0, %v2061_v56  ;;  %v2064_v56 = vld [vmem:[#allocation9 + $0x8] sm:$0xff]  }
 0x2a2   :  { %1980 = vmatprep.mubr.msk.bf16.mxu0 %vm2305_vm1, %v2303_v0 }
 0x2a3   :  { %419 = vrot.lane.b32.xlu1 %v402_v58, %s2306_s19 }
 0x30d   :  { %v428_v4 = vpop.permute.xlu0 %427 }
 0x30e   :  { %433 = vst.msk [vmem:[#allocation4] sm:$0xff] %vm146_vm0, %v428_v4 }
 0x311   :  { %v430_v5 = vpop.permute.xlu1 %429  ;;  %v418_v6 = vpop.permute.xlu0 %417 }
 0x312   :  { %434 = vst.msk [vmem:[#allocation4 + $0x8] sm:$0xff] %vm146_vm0, %v430_v5  ;;  %423 = vst.msk [vmem:[#allocation5] sm:$0xff] %vm146_vm0, %v418_v6 }
 0x315   :  { %v420_v7 = vpop.permute.xlu1 %419  ;;  %v458_v8 = vld [vmem:[#allocation4] sm:$0xff] }
 0x316   :  { %424 = vst.msk [vmem:[#allocation5 + $0x8] sm:$0xff] %vm146_vm0, %v420_v7 }
 0x319   :  { %v459_v9 = vld [vmem:[#allocation4 + $0x8] sm:$0xff]  ;;  %v537_v32 = vld [vmem:[#allocation5] sm:$0xff] }
 0x31a   :  { %v460_v10 = vpack.c.bf16 %v459_v9, %v458_v8 }
 0x31c   :  { %1957 = vmatmul.mubr.msk.bf16.vlgmr.msra.gmra.mrb[12].mxu1 %vm146_vm0, %v460_v10 }
 0x31d   :  { %1964 = vmatprep.mubr.msk.bf16.mxu1 %vm2305_vm1, %v2303_v0  ;;  %v538_v19 = vld [vmem:[#allocation5 + $0x8] sm:$0xff]  ;;  %1961 = vmatpush3.bf16.msra.mxu1 %v2059_v54 }
 0x31e   :  { %1962 = vmatprep.subr.bf16.mxu1 %v2303_v0 }
 0x321   :  { %1963 = vmatpush3.bf16.msra.mxu1 %v2062_v57 }
 0x322   :  { %1968 = vmatprep.subr.bf16.mxu1 %v2303_v0 }
 0x374   :  { %v2513_v8 = vpop.f32.mrb[4].mxu0 }
 0x375   :  { %v221_v9 = vpop.f32.mrb[5].mxu0 }
 0x376   :  { %v2515_v10 = vpop.f32.mrb[6].mxu0 }
 0x3ef   :  { %v514_v12 = vpop.f32.mrb[12].mxu1 }
 0x3f0   :  { %v521_v14 = vadd.f32 %v514_v12, %v214_v11  ;;  %v1958_v15 = vpop.f32.mrb[13].mxu1  ;;  %v224_v11 = vpop.f32.mrb[7].mxu0  ;;  %v222_v12 = vadd.f32 %v2449_v28, %v221_v9 }
 0x3f1   :  { %v517_v21 = vpop.f32.mrb[14].mxu1 }
 0x3f2   :  { %2091 = vtanh.f32 %v521_v14  ;;  %v522_v23 = vadd.f32 %v517_v21, %v217_v13  ;;  %v1959_v29 = vpop.f32.mrb[15].mxu1  ;;  %v1837_v22 = vmul.f32 -1.442695, %v521_v14  ;;  %v225_v14 = vadd.f32 %v2449_v28, %v224_v11 }
 0x3f3   :  { %v230_v11 = vadd.f32 %v2513_v8, %v2449_v28 }
 0x3f4   :  { %2093 = vtanh.f32 %v522_v23  ;;  %v1838_v33 = vmul.f32 -1.442695, %v522_v23 }
 0x3f5   :  { %2095 = vpow2.f32 %v1837_v22 }
 0x3f6   :  { %2097 = vpow2.f32 %v1838_v33 }
 0x3fc   :  { %v2092_v30 = vpop.eup %2091 }
 0x3fd   :  { %551 = vrot.lane.b32.xlu0 %v2092_v30, %s2300_s13 }
 0x3fe   :  { %v2094_v31 = vpop.eup %2093 }
 0x3ff   :  { %553 = vrot.lane.b32.xlu1 %v2094_v31, %s2300_s13  ;;  %v2096_v34 = vpop.eup %2095 }
 0x400   :  { %v2098_v35 = vpop.eup %2097  ;;  %v529_v36 = vadd.f32 1.0, %v2096_v34 }
 0x401   :  { %541 = vrot.lane.b32.xlu0 %v537_v32, %s2304_s1  ;;  %v530_v37 = vadd.f32 1.0, %v2098_v35 }
 0x402   :  { %2099 = vrcp.f32 %v529_v36 }
 0x403   :  { %543 = vrot.lane.b32.xlu1 %v538_v19, %s2304_s1  ;;  %2101 = vrcp.f32 %v530_v37 }
 0x40c   :  { %v2100_v38 = vpop.eup %2099 }
 0x40d   :  { %v2102_v41 = vpop.eup %2101 }
 0x46f   :  { %v552_v39 = vpop.permute.xlu0 %551 }
 0x470   :  { %v557_v40 = vmul.f32 %v2100_v38, %v552_v39 }
 0x471   :  { %v554_v42 = vpop.permute.xlu1 %553 }
 0x472   :  { %561 = vrot.lane.b32.xlu0 %v557_v40, %s2304_s1  ;;  %v558_v43 = vmul.f32 %v2102_v41, %v554_v42 }
 0x473   :  { %v542_v44 = vpop.permute.xlu0 %541 }
 0x474   :  { %563 = vrot.lane.b32.xlu1 %v558_v43, %s2304_s1  ;;  %v547_v45 = vmul.f32 %v2100_v38, %v542_v44 }
 0x475   :  { %v544_v46 = vpop.permute.xlu1 %543 }
 0x476   :  { %v548_v49 = vmul.f32 %v2102_v41, %v544_v46 }
 0x4e4   :  { %v562_v47 = vpop.permute.xlu0 %561 }
 0x4e5   :  { %v567_v48 = vadd.f32 %v562_v47, %v547_v45 }
 0x4e6   :  { %v564_v50 = vpop.permute.xlu1 %563 }
 0x4e7   :  { %2103 = vtanh.f32 %v567_v48  ;;  %v568_v51 = vadd.f32 %v564_v50, %v548_v49 }
 0x4e9   :  { %2105 = vtanh.f32 %v568_v51 }
 0x4f1   :  { %v2104_v52 = vpop.eup %2103 }
 0x4f2   :  { %573 = vrot.lane.b32.xlu0 %v2104_v52, %s2300_s13 }
 0x4f3   :  { %v2106_v53 = vpop.eup %2105 }
 0x4f4   :  { %575 = vrot.lane.b32.xlu1 %v2106_v53, %s2300_s13 }
 0x564   :  { %v574_v58 = vpop.permute.xlu0 %573 }
 0x565   :  { %v2495_v59 = vmul.f32 %v2100_v38, %v574_v58 }
 0x566   :  { %v576_v60 = vpop.permute.xlu1 %575 }
 0x567   :  { %593 = vrot.lane.b32.xlu0 %v2495_v59, %s2304_s1  ;;  %v2500_v61 = vmul.f32 %v2102_v41, %v576_v60 }
 0x569   :  { %595 = vrot.lane.b32.xlu1 %v2500_v61, %s2304_s1 }
 0x56b   :  { %583 = vrot.lane.b32.xlu0 %v567_v48, %s2306_s19 }
 0x56d   :  { %585 = vrot.lane.b32.xlu1 %v568_v51, %s2306_s19 }
 0x5d9   :  { %v594_v62 = vpop.permute.xlu0 %593 }
 0x5da   :  { %599 = vst.msk [vmem:[#allocation4] sm:$0xff] %vm146_vm0, %v594_v62 }
 0x5db   :  { %v596_v63 = vpop.permute.xlu1 %595 }
 0x5dc   :  { %600 = vst.msk [vmem:[#allocation4 + $0x8] sm:$0xff] %vm146_vm0, %v596_v63 }
 0x5dd   :  { %v584_v2 = vpop.permute.xlu0 %583 }
 0x5de   :  { %589 = vst.msk [vmem:[#allocation5] sm:$0xff] %vm146_vm0, %v584_v2 }
 0x5df   :  { %v586_v4 = vpop.permute.xlu1 %585 }
 0x5e0   :  { %590 = vst.msk [vmem:[#allocation5 + $0x8] sm:$0xff] %vm146_vm0, %v586_v4 }
 0x5e1   :  { %v625_v5 = vld [vmem:[#allocation4] sm:$0xff] }
 0x5e3   :  { %v626_v6 = vld [vmem:[#allocation4 + $0x8] sm:$0xff] }
 0x5e4   :  { %v627_v7 = vpack.c.bf16 %v626_v6, %v625_v5 }
 0x5e5   :  { %v704_v19 = vld [vmem:[#allocation5] sm:$0xff] }
 0x5e6   :  { %1965 = vmatmul.mubr.msk.bf16.vlgmr.msra.gmra.mrb[16].mxu1 %vm146_vm0, %v627_v7 }
 0x5e7   :  { %1972 = vmatprep.mubr.msk.bf16.mxu1 %vm2305_vm1, %v2303_v0  ;;  %v705_v22 = vld [vmem:[#allocation5 + $0x8] sm:$0xff]  ;;  %1969 = vmatpush3.bf16.msra.mxu1 %v2063_v55 }
 0x5e8   :  { %1970 = vmatprep.subr.bf16.mxu1 %v2303_v0 }
 0x5eb   :  { %1971 = vmatpush3.bf16.msra.mxu1 %v2064_v56 }
 0x5ec   :  { %1984 = vmatprep.subr.bf16.mxu1 %v2303_v0 }
 0x6b9   :  { %v681_v13 = vpop.f32.mrb[16].mxu1 }
 0x6ba   :  { %v688_v15 = vadd.f32 %v681_v13, %v222_v12  ;;  %v1966_v21 = vpop.f32.mrb[17].mxu1  ;;  %v233_v13 = vadd.f32 %v2515_v10, %v2449_v28 }
 0x6bb   :  { %v684_v23 = vpop.f32.mrb[18].mxu1 }
 0x6bc   :  { %2107 = vtanh.f32 %v688_v15  ;;  %v689_v29 = vadd.f32 %v684_v23, %v225_v14  ;;  %v1967_v30 = vpop.f32.mrb[19].mxu1  ;;  %v1842_v33 = vmul.f32 -1.442695, %v688_v15 }
 0x6be   :  { %2109 = vtanh.f32 %v689_v29  ;;  %v1843_v34 = vmul.f32 -1.442695, %v689_v29 }
 0x6bf   :  { %2111 = vpow2.f32 %v1842_v33 }
 0x6c0   :  { %2113 = vpow2.f32 %v1843_v34 }
 0x6c6   :  { %v2108_v31 = vpop.eup %2107 }
 0x6c7   :  { %718 = vrot.lane.b32.xlu0 %v2108_v31, %s2300_s13 }
 0x6c8   :  { %v2110_v32 = vpop.eup %2109 }
 0x6c9   :  { %720 = vrot.lane.b32.xlu1 %v2110_v32, %s2300_s13  ;;  %v2112_v35 = vpop.eup %2111 }
 0x6ca   :  { %v2114_v36 = vpop.eup %2113  ;;  %v696_v37 = vadd.f32 1.0, %v2112_v35 }
 0x6cb   :  { %708 = vrot.lane.b32.xlu0 %v704_v19, %s2304_s1  ;;  %v697_v38 = vadd.f32 1.0, %v2114_v36 }
 0x6cc   :  { %2115 = vrcp.f32 %v696_v37 }
 0x6cd   :  { %710 = vrot.lane.b32.xlu1 %v705_v22, %s2304_s1  ;;  %2117 = vrcp.f32 %v697_v38 }
 0x6d6   :  { %v2116_v39 = vpop.eup %2115 }
 0x6d7   :  { %v2118_v42 = vpop.eup %2117 }
 0x739   :  { %v719_v40 = vpop.permute.xlu0 %718 }
 0x73a   :  { %v724_v41 = vmul.f32 %v2116_v39, %v719_v40 }
 0x73b   :  { %v721_v43 = vpop.permute.xlu1 %720 }
 0x73c   :  { %728 = vrot.lane.b32.xlu0 %v724_v41, %s2304_s1  ;;  %v725_v44 = vmul.f32 %v2118_v42, %v721_v43 }
 0x73d   :  { %v709_v45 = vpop.permute.xlu0 %708 }
 0x73e   :  { %730 = vrot.lane.b32.xlu1 %v725_v44, %s2304_s1  ;;  %v714_v46 = vmul.f32 %v2116_v39, %v709_v45 }
 0x73f   :  { %v711_v47 = vpop.permute.xlu1 %710 }
 0x740   :  { %v715_v50 = vmul.f32 %v2118_v42, %v711_v47 }
 0x7ae   :  { %v729_v48 = vpop.permute.xlu0 %728 }
 0x7af   :  { %v734_v49 = vadd.f32 %v729_v48, %v714_v46 }
 0x7b0   :  { %v731_v51 = vpop.permute.xlu1 %730 }
 0x7b1   :  { %2119 = vtanh.f32 %v734_v49  ;;  %v735_v52 = vadd.f32 %v731_v51, %v715_v50  ;;  %v2065_v50 = vld [vmem:[#allocation9] sm:$0xff]  }
 0x7b2   :  { %1977 = vmatpush3.bf16.msra.mxu0 %v2065_v50  ;;  %v2068_v50 = vld [vmem:[#allocation9 + $0x8] sm:$0xff]  }
 0x7b3   :  { %2121 = vtanh.f32 %v735_v52  ;;  %1978 = vmatprep.subr.bf16.mxu0 %v2303_v0 }
 0x7bb   :  { %v2120_v53 = vpop.eup %2119 }
 0x7bc   :  { %740 = vrot.lane.b32.xlu0 %v2120_v53, %s2300_s13  ;;  %v2066_v53 = vld [vmem:[#allocation9 + $0x8] sm:$0xff]  }
 0x7bd   :  { %v2122_v54 = vpop.eup %2121  ;;  %1979 = vmatpush3.bf16.msra.mxu0 %v2066_v53 }
 0x7be   :  { %742 = vrot.lane.b32.xlu1 %v2122_v54, %s2300_s13  ;;  %1992 = vmatprep.subr.bf16.mxu0 %v2303_v0 }
 0x82e   :  { %v741_v57 = vpop.permute.xlu0 %740 }
 0x82f   :  { %v2528_v58 = vmul.f32 %v2116_v39, %v741_v57 }
 0x830   :  { %v743_v60 = vpop.permute.xlu1 %742 }
 0x831   :  { %760 = vrot.lane.b32.xlu0 %v2528_v58, %s2304_s1  ;;  %v2533_v62 = vmul.f32 %v2118_v42, %v743_v60 }
 0x833   :  { %762 = vrot.lane.b32.xlu1 %v2533_v62, %s2304_s1 }
 0x835   :  { %750 = vrot.lane.b32.xlu0 %v734_v49, %s2306_s19 }
 0x837   :  { %752 = vrot.lane.b32.xlu1 %v735_v52, %s2306_s19 }
 0x8a3   :  { %v761_v63 = vpop.permute.xlu0 %760 }
 0x8a4   :  { %766 = vst.msk [vmem:[#allocation4] sm:$0xff] %vm146_vm0, %v761_v63 }
 0x8a5   :  { %v763_v2 = vpop.permute.xlu1 %762 }
 0x8a6   :  { %767 = vst.msk [vmem:[#allocation4 + $0x8] sm:$0xff] %vm146_vm0, %v763_v2 }
 0x8a7   :  { %v751_v4 = vpop.permute.xlu0 %750 }
 0x8a8   :  { %756 = vst.msk [vmem:[#allocation5] sm:$0xff] %vm146_vm0, %v751_v4 }
 0x8a9   :  { %v753_v5 = vpop.permute.xlu1 %752 }
 0x8aa   :  { %757 = vst.msk [vmem:[#allocation5 + $0x8] sm:$0xff] %vm146_vm0, %v753_v5 }
 0x8ab   :  { %v792_v6 = vld [vmem:[#allocation4] sm:$0xff] }
 0x8ad   :  { %v793_v7 = vld [vmem:[#allocation4 + $0x8] sm:$0xff] }
 0x8ae   :  { %v794_v9 = vpack.c.bf16 %v793_v7, %v792_v6 }
 0x8af   :  { %v871_v32 = vld [vmem:[#allocation5] sm:$0xff] }
 0x8b0   :  { %1973 = vmatmul.mubr.msk.bf16.vlgmr.msra.gmra.mrb[20].mxu1 %vm146_vm0, %v794_v9  ;;  %v238_v9 = vadd.f32 %v2449_v28, %v2431_v17 }
 0x8b1   :  { %1988 = vmatprep.mubr.msk.bf16.mxu1 %vm2305_vm1, %v2303_v0  ;;  %v872_v8 = vld [vmem:[#allocation5 + $0x8] sm:$0xff] }
 0x983   :  { %v848_v12 = vpop.f32.mrb[20].mxu1 }
 0x984   :  { %v855_v14 = vadd.f32 %v848_v12, %v230_v11  ;;  %v1974_v15 = vpop.f32.mrb[21].mxu1  ;;  %v241_v12 = vadd.f32 %v2449_v28, %v2437_v20 }
 0x985   :  { %v851_v21 = vpop.f32.mrb[22].mxu1 }
 0x986   :  { %2123 = vtanh.f32 %v855_v14  ;;  %v856_v23 = vadd.f32 %v851_v21, %v233_v13  ;;  %v1975_v29 = vpop.f32.mrb[23].mxu1  ;;  %v1847_v10 = vmul.f32 -1.442695, %v855_v14 }
 0x988   :  { %2125 = vtanh.f32 %v856_v23  ;;  %v1848_v19 = vmul.f32 -1.442695, %v856_v23 }
 0x989   :  { %2127 = vpow2.f32 %v1847_v10 }
 0x98a   :  { %2129 = vpow2.f32 %v1848_v19 }
 0x990   :  { %v2124_v30 = vpop.eup %2123 }
 0x991   :  { %885 = vrot.lane.b32.xlu0 %v2124_v30, %s2300_s13 }
 0x992   :  { %v2126_v31 = vpop.eup %2125 }
 0x993   :  { %887 = vrot.lane.b32.xlu1 %v2126_v31, %s2300_s13  ;;  %v2128_v22 = vpop.eup %2127 }
 0x994   :  { %v2130_v33 = vpop.eup %2129  ;;  %v863_v34 = vadd.f32 1.0, %v2128_v22 }
 0x995   :  { %875 = vrot.lane.b32.xlu0 %v871_v32, %s2304_s1  ;;  %v864_v35 = vadd.f32 1.0, %v2130_v33 }
 0x996   :  { %2131 = vrcp.f32 %v863_v34 }
 0x997   :  { %877 = vrot.lane.b32.xlu1 %v872_v8, %s2304_s1  ;;  %2133 = vrcp.f32 %v864_v35 }
 0x9a0   :  { %v2132_v36 = vpop.eup %2131 }
 0x9a1   :  { %v2134_v39 = vpop.eup %2133 }
 0xa03   :  { %v886_v37 = vpop.permute.xlu0 %885 }
 0xa04   :  { %v891_v38 = vmul.f32 %v2132_v36, %v886_v37 }
 0xa05   :  { %v888_v40 = vpop.permute.xlu1 %887 }
 0xa06   :  { %895 = vrot.lane.b32.xlu0 %v891_v38, %s2304_s1  ;;  %v892_v41 = vmul.f32 %v2134_v39, %v888_v40 }
 0xa07   :  { %v876_v42 = vpop.permute.xlu0 %875 }
 0xa08   :  { %897 = vrot.lane.b32.xlu1 %v892_v41, %s2304_s1  ;;  %v881_v43 = vmul.f32 %v2132_v36, %v876_v42 }
 0xa09   :  { %v878_v44 = vpop.permute.xlu1 %877 }
 0xa0a   :  { %v882_v47 = vmul.f32 %v2134_v39, %v878_v44 }
 0xa78   :  { %v896_v45 = vpop.permute.xlu0 %895 }
 0xa79   :  { %v901_v46 = vadd.f32 %v896_v45, %v881_v43 }
 0xa7a   :  { %v898_v48 = vpop.permute.xlu1 %897 }
 0xa7b   :  { %2135 = vtanh.f32 %v901_v46  ;;  %v902_v49 = vadd.f32 %v898_v48, %v882_v47 }
 0xa7d   :  { %2137 = vtanh.f32 %v902_v49 }
 0xa85   :  { %v2136_v51 = vpop.eup %2135 }
 0xa86   :  { %907 = vrot.lane.b32.xlu0 %v2136_v51, %s2300_s13 }
 0xa87   :  { %v2138_v52 = vpop.eup %2137 }
 0xa88   :  { %909 = vrot.lane.b32.xlu1 %v2138_v52, %s2300_s13 }
 0xaf8   :  { %v908_v54 = vpop.permute.xlu0 %907 }
 0xaf9   :  { %v2560_v55 = vmul.f32 %v2132_v36, %v908_v54 }
 0xafa   :  { %v910_v56 = vpop.permute.xlu1 %909 }
 0xafb   :  { %927 = vrot.lane.b32.xlu0 %v2560_v55, %s2304_s1  ;;  %v2564_v57 = vmul.f32 %v2134_v39, %v910_v56 }
 0xafd   :  { %929 = vrot.lane.b32.xlu1 %v2564_v57, %s2304_s1 }
 0xaff   :  { %917 = vrot.lane.b32.xlu0 %v901_v46, %s2306_s19 }
 0xb01   :  { %919 = vrot.lane.b32.xlu1 %v902_v49, %s2306_s19  ;;  %v2067_v49 = vld [vmem:[#allocation9] sm:$0xff]  }
 0xb02   :  { %1985 = vmatpush3.bf16.msra.mxu1 %v2067_v49 }
 0xb03   :  { %1986 = vmatprep.subr.bf16.mxu1 %v2303_v0 }
 0xb06   :  { %1987 = vmatpush3.bf16.msra.mxu1 %v2068_v50 }
 0xb07   :  { %2000 = vmatprep.subr.bf16.mxu1 %v2303_v0 }
 0xb6d   :  { %v928_v60 = vpop.permute.xlu0 %927 }
 0xb6e   :  { %933 = vst.msk [vmem:[#allocation4] sm:$0xff] %vm146_vm0, %v928_v60 }
 0xb6f   :  { %v930_v63 = vpop.permute.xlu1 %929 }
 0xb70   :  { %934 = vst.msk [vmem:[#allocation4 + $0x8] sm:$0xff] %vm146_vm0, %v930_v63 }
 0xb71   :  { %v918_v2 = vpop.permute.xlu0 %917 }
 0xb72   :  { %923 = vst.msk [vmem:[#allocation5] sm:$0xff] %vm146_vm0, %v918_v2 }
 0xb73   :  { %v920_v4 = vpop.permute.xlu1 %919 }
 0xb74   :  { %924 = vst.msk [vmem:[#allocation5 + $0x8] sm:$0xff] %vm146_vm0, %v920_v4 }
 0xb75   :  { %v959_v5 = vld [vmem:[#allocation4] sm:$0xff] }
 0xb77   :  { %v960_v6 = vld [vmem:[#allocation4 + $0x8] sm:$0xff] }
 0xb78   :  { %v961_v7 = vpack.c.bf16 %v960_v6, %v959_v5 }
 0xb79   :  { %v1038_v31 = vld [vmem:[#allocation5] sm:$0xff] }
 0xb7a   :  { %1981 = vmatmul.mubr.msk.bf16.vlgmr.msra.gmra.mrb[8].mxu0 %vm146_vm0, %v961_v7  ;;  %v246_v7 = vadd.f32 %v2429_v16, %v2449_v28 }
 0xb7b   :  { %1996 = vmatprep.mubr.msk.bf16.mxu0 %vm2305_vm1, %v2303_v0  ;;  %v1039_v17 = vld [vmem:[#allocation5 + $0x8] sm:$0xff] }
 0xc4d   :  { %v1015_v11 = vpop.f32.mrb[8].mxu0 }
 0xc4e   :  { %v1022_v13 = vadd.f32 %v1015_v11, %v238_v9  ;;  %v1982_v14 = vpop.f32.mrb[9].mxu0  ;;  %v249_v11 = vadd.f32 %v2433_v18, %v2449_v28 }
 0xc4f   :  { %v1018_v15 = vpop.f32.mrb[10].mxu0 }
 0xc50   :  { %2139 = vtanh.f32 %v1022_v13  ;;  %v1023_v21 = vadd.f32 %v1018_v15, %v241_v12  ;;  %v1983_v23 = vpop.f32.mrb[11].mxu0  ;;  %v1852_v20 = vmul.f32 -1.442695, %v1022_v13 }
 0xc52   :  { %2141 = vtanh.f32 %v1023_v21  ;;  %v1853_v32 = vmul.f32 -1.442695, %v1023_v21 }
 0xc53   :  { %2143 = vpow2.f32 %v1852_v20 }
 0xc54   :  { %2145 = vpow2.f32 %v1853_v32 }
 0xc5a   :  { %v2140_v29 = vpop.eup %2139 }
 0xc5b   :  { %1052 = vrot.lane.b32.xlu0 %v2140_v29, %s2300_s13 }
 0xc5c   :  { %v2142_v30 = vpop.eup %2141 }
 0xc5d   :  { %1054 = vrot.lane.b32.xlu1 %v2142_v30, %s2300_s13  ;;  %v2144_v8 = vpop.eup %2143 }
 0xc5e   :  { %v2146_v10 = vpop.eup %2145  ;;  %v1030_v19 = vadd.f32 1.0, %v2144_v8 }
 0xc5f   :  { %1042 = vrot.lane.b32.xlu0 %v1038_v31, %s2304_s1  ;;  %v1031_v22 = vadd.f32 1.0, %v2146_v10 }
 0xc60   :  { %2147 = vrcp.f32 %v1030_v19 }
 0xc61   :  { %1044 = vrot.lane.b32.xlu1 %v1039_v17, %s2304_s1  ;;  %2149 = vrcp.f32 %v1031_v22 }
 0xc6a   :  { %v2148_v33 = vpop.eup %2147 }
 0xc6b   :  { %v2150_v36 = vpop.eup %2149 }
 0xccd   :  { %v1053_v34 = vpop.permute.xlu0 %1052 }
 0xcce   :  { %v1058_v35 = vmul.f32 %v2148_v33, %v1053_v34 }
 0xccf   :  { %v1055_v37 = vpop.permute.xlu1 %1054 }
 0xcd0   :  { %1062 = vrot.lane.b32.xlu0 %v1058_v35, %s2304_s1  ;;  %v1059_v38 = vmul.f32 %v2150_v36, %v1055_v37 }
 0xcd1   :  { %v1043_v39 = vpop.permute.xlu0 %1042 }
 0xcd2   :  { %1064 = vrot.lane.b32.xlu1 %v1059_v38, %s2304_s1  ;;  %v1048_v40 = vmul.f32 %v2148_v33, %v1043_v39 }
 0xcd3   :  { %v1045_v41 = vpop.permute.xlu1 %1044 }
 0xcd4   :  { %v1049_v44 = vmul.f32 %v2150_v36, %v1045_v41 }
 0xd42   :  { %v1063_v42 = vpop.permute.xlu0 %1062 }
 0xd43   :  { %v1068_v43 = vadd.f32 %v1063_v42, %v1048_v40 }
 0xd44   :  { %v1065_v45 = vpop.permute.xlu1 %1064 }
 0xd45   :  { %2151 = vtanh.f32 %v1068_v43  ;;  %v1069_v46 = vadd.f32 %v1065_v45, %v1049_v44 }
 0xd47   :  { %2153 = vtanh.f32 %v1069_v46 }
 0xd4f   :  { %v2152_v47 = vpop.eup %2151 }
 0xd50   :  { %1074 = vrot.lane.b32.xlu0 %v2152_v47, %s2300_s13  ;;  %v2070_v47 = vld [vmem:[#allocation9 + $0x8] sm:$0xff]  }
 0xd51   :  { %v2154_v48 = vpop.eup %2153 }
 0xd52   :  { %1076 = vrot.lane.b32.xlu1 %v2154_v48, %s2300_s13 }
 0xdc2   :  { %v1075_v51 = vpop.permute.xlu0 %1074 }
 0xdc3   :  { %v2590_v52 = vmul.f32 %v2148_v33, %v1075_v51 }
 0xdc4   :  { %v1077_v53 = vpop.permute.xlu1 %1076 }
 0xdc5   :  { %1094 = vrot.lane.b32.xlu0 %v2590_v52, %s2304_s1  ;;  %v2595_v54 = vmul.f32 %v2150_v36, %v1077_v53 }
 0xdc7   :  { %1096 = vrot.lane.b32.xlu1 %v2595_v54, %s2304_s1 }
 0xdc9   :  { %1084 = vrot.lane.b32.xlu0 %v1068_v43, %s2306_s19 }
 0xdcb   :  { %1086 = vrot.lane.b32.xlu1 %v1069_v46, %s2306_s19  ;;  %v2069_v46 = vld [vmem:[#allocation9] sm:$0xff]  }
 0xdcc   :  { %1993 = vmatpush3.bf16.msra.mxu0 %v2069_v46 }
 0xdcd   :  { %1994 = vmatprep.subr.bf16.mxu0 %v2303_v0 }
 0xdd0   :  { %1995 = vmatpush3.bf16.msra.mxu0 %v2070_v47 }
 0xe37   :  { %v1095_v56 = vpop.permute.xlu0 %1094 }
 0xe38   :  { %1100 = vst.msk [vmem:[#allocation4] sm:$0xff] %vm146_vm0, %v1095_v56 }
 0xe39   :  { %v1097_v60 = vpop.permute.xlu1 %1096 }
 0xe3a   :  { %1101 = vst.msk [vmem:[#allocation4 + $0x8] sm:$0xff] %vm146_vm0, %v1097_v60 }
 0xe3b   :  { %v1085_v63 = vpop.permute.xlu0 %1084 }
 0xe3c   :  { %1090 = vst.msk [vmem:[#allocation5] sm:$0xff] %vm146_vm0, %v1085_v63 }
 0xe3d   :  { %v1087_v2 = vpop.permute.xlu1 %1086 }
 0xe3e   :  { %1091 = vst.msk [vmem:[#allocation5 + $0x8] sm:$0xff] %vm146_vm0, %v1087_v2 }
 0xe3f   :  { %v1126_v4 = vld [vmem:[#allocation4] sm:$0xff] }
 0xe41   :  { %v1127_v5 = vld [vmem:[#allocation4 + $0x8] sm:$0xff] }
 0xe42   :  { %v1128_v6 = vpack.c.bf16 %v1127_v5, %v1126_v4 }
 0xe43   :  { %v1205_v30 = vld [vmem:[#allocation5] sm:$0xff] }
 0xe44   :  { %1989 = vmatmul.mubr.msk.bf16.vlgmr.msra.gmra.mrb[24].mxu1 %vm146_vm0, %v1128_v6  ;;  %v254_v6 = vadd.f32 %v2449_v28, %v2443_v25 }
 0xe45   :  { %2004 = vmatprep.mubr.msk.bf16.mxu1 %vm2305_vm1, %v2303_v0  ;;  %v1206_v16 = vld [vmem:[#allocation5 + $0x8] sm:$0xff] }
 0xf17   :  { %v1182_v9 = vpop.f32.mrb[24].mxu1 }
 0xf18   :  { %v1189_v12 = vadd.f32 %v1182_v9, %v246_v7  ;;  %v1990_v13 = vpop.f32.mrb[25].mxu1  ;;  %v257_v9 = vadd.f32 %v2449_v28, %v2447_v27 }
 0xf19   :  { %v1185_v14 = vpop.f32.mrb[26].mxu1 }
 0xf1a   :  { %2155 = vtanh.f32 %v1189_v12  ;;  %v1190_v15 = vadd.f32 %v1185_v14, %v249_v11  ;;  %v1991_v21 = vpop.f32.mrb[27].mxu1  ;;  %v1857_v18 = vmul.f32 -1.442695, %v1189_v12 }
 0xf1c   :  { %2157 = vtanh.f32 %v1190_v15  ;;  %v1858_v31 = vmul.f32 -1.442695, %v1190_v15 }
 0xf1d   :  { %2159 = vpow2.f32 %v1857_v18 }
 0xf1e   :  { %2161 = vpow2.f32 %v1858_v31 }
 0xf24   :  { %v2156_v23 = vpop.eup %2155 }
 0xf25   :  { %1219 = vrot.lane.b32.xlu0 %v2156_v23, %s2300_s13 }
 0xf26   :  { %v2158_v29 = vpop.eup %2157 }
 0xf27   :  { %1221 = vrot.lane.b32.xlu1 %v2158_v29, %s2300_s13  ;;  %v2160_v17 = vpop.eup %2159 }
 0xf28   :  { %v2162_v20 = vpop.eup %2161  ;;  %v1197_v32 = vadd.f32 1.0, %v2160_v17 }
 0xf29   :  { %1209 = vrot.lane.b32.xlu0 %v1205_v30, %s2304_s1  ;;  %v1198_v8 = vadd.f32 1.0, %v2162_v20 }
 0xf2a   :  { %2163 = vrcp.f32 %v1197_v32 }
 0xf2b   :  { %1211 = vrot.lane.b32.xlu1 %v1206_v16, %s2304_s1  ;;  %2165 = vrcp.f32 %v1198_v8 }
 0xf34   :  { %v2164_v10 = vpop.eup %2163 }
 0xf35   :  { %v2166_v33 = vpop.eup %2165 }
 0xf97   :  { %v1220_v19 = vpop.permute.xlu0 %1219 }
 0xf98   :  { %v1225_v22 = vmul.f32 %v2164_v10, %v1220_v19 }
 0xf99   :  { %v1222_v34 = vpop.permute.xlu1 %1221 }
 0xf9a   :  { %1229 = vrot.lane.b32.xlu0 %v1225_v22, %s2304_s1  ;;  %v1226_v35 = vmul.f32 %v2166_v33, %v1222_v34 }
 0xf9b   :  { %v1210_v36 = vpop.permute.xlu0 %1209 }
 0xf9c   :  { %1231 = vrot.lane.b32.xlu1 %v1226_v35, %s2304_s1  ;;  %v1215_v37 = vmul.f32 %v2164_v10, %v1210_v36 }
 0xf9d   :  { %v1212_v38 = vpop.permute.xlu1 %1211 }
 0xf9e   :  { %v1216_v41 = vmul.f32 %v2166_v33, %v1212_v38 }
0x100c   :  { %v1230_v39 = vpop.permute.xlu0 %1229 }
0x100d   :  { %v1235_v40 = vadd.f32 %v1230_v39, %v1215_v37 }
0x100e   :  { %v1232_v42 = vpop.permute.xlu1 %1231 }
0x100f   :  { %2167 = vtanh.f32 %v1235_v40  ;;  %v1236_v43 = vadd.f32 %v1232_v42, %v1216_v41  ;;  %v2071_v42 = vld [vmem:[#allocation9] sm:$0xff]  }
0x1010   :  { %2001 = vmatpush3.bf16.msra.mxu1 %v2071_v42 }
0x1011   :  { %2169 = vtanh.f32 %v1236_v43  ;;  %2002 = vmatprep.subr.bf16.mxu1 %v2303_v0 }
0x1019   :  { %v2168_v44 = vpop.eup %2167 }
0x101a   :  { %1241 = vrot.lane.b32.xlu0 %v2168_v44, %s2300_s13 }
0x101b   :  { %v2170_v45 = vpop.eup %2169 }
0x101c   :  { %1243 = vrot.lane.b32.xlu1 %v2170_v45, %s2300_s13 }
0x108c   :  { %v1242_v48 = vpop.permute.xlu0 %1241 }
0x108d   :  { %v2621_v49 = vmul.f32 %v2164_v10, %v1242_v48 }
0x108e   :  { %v1244_v50 = vpop.permute.xlu1 %1243 }
0x108f   :  { %1261 = vrot.lane.b32.xlu0 %v2621_v49, %s2304_s1  ;;  %v2625_v51 = vmul.f32 %v2166_v33, %v1244_v50 }
0x1091   :  { %1263 = vrot.lane.b32.xlu1 %v2625_v51, %s2304_s1 }
0x1093   :  { %1251 = vrot.lane.b32.xlu0 %v1235_v40, %s2306_s19 }
0x1095   :  { %1253 = vrot.lane.b32.xlu1 %v1236_v43, %s2306_s19  ;;  %v2072_v43 = vld [vmem:[#allocation9 + $0x8] sm:$0xff]  }
0x1096   :  { %2003 = vmatpush3.bf16.msra.mxu1 %v2072_v43 }
0x1101   :  { %v1262_v53 = vpop.permute.xlu0 %1261 }
0x1102   :  { %1267 = vst.msk [vmem:[#allocation4] sm:$0xff] %vm146_vm0, %v1262_v53 }
0x1103   :  { %v1264_v56 = vpop.permute.xlu1 %1263 }
0x1104   :  { %1268 = vst.msk [vmem:[#allocation4 + $0x8] sm:$0xff] %vm146_vm0, %v1264_v56 }
0x1105   :  { %v1252_v60 = vpop.permute.xlu0 %1251 }
0x1106   :  { %1257 = vst.msk [vmem:[#allocation5] sm:$0xff] %vm146_vm0, %v1252_v60 }
0x1107   :  { %v1254_v63 = vpop.permute.xlu1 %1253 }
0x1108   :  { %1258 = vst.msk [vmem:[#allocation5 + $0x8] sm:$0xff] %vm146_vm0, %v1254_v63 }
0x1109   :  { %v1293_v2 = vld [vmem:[#allocation4] sm:$0xff] }
0x110b   :  { %v1294_v4 = vld [vmem:[#allocation4 + $0x8] sm:$0xff] }
0x110c   :  { %v1295_v5 = vpack.c.bf16 %v1294_v4, %v1293_v2  ;;  %v2203_v2 = vld [vmem:[#allocation11] ss:$0 sm:$0xff] }
0x110d   :  { %v1372_v29 = vld [vmem:[#allocation5] sm:$0xff]  ;;  %v262_v4 = vadd.f32 %v2203_v2, %v2441_v24 }
0x110e   :  { %1997 = vmatmul.mubr.msk.bf16.vlgmr.msra.gmra.mrb[12].mxu0 %vm146_vm0, %v1295_v5 }
0x110f   :  { %v1373_v25 = vld [vmem:[#allocation5 + $0x8] sm:$0xff] }
0x11e1   :  { %v1349_v7 = vpop.f32.mrb[12].mxu0 }
0x11e2   :  { %v1356_v11 = vadd.f32 %v1349_v7, %v254_v6  ;;  %v1998_v12 = vpop.f32.mrb[13].mxu0  ;;  %v265_v6 = vadd.f32 %v2203_v2, %v2445_v26 }
0x11e3   :  { %v1352_v13 = vpop.f32.mrb[14].mxu0 }
0x11e4   :  { %2171 = vtanh.f32 %v1356_v11  ;;  %v1357_v14 = vadd.f32 %v1352_v13, %v257_v9  ;;  %v1999_v15 = vpop.f32.mrb[15].mxu0  ;;  %v1862_v27 = vmul.f32 -1.442695, %v1356_v11 }
0x11e6   :  { %2173 = vtanh.f32 %v1357_v14  ;;  %v1863_v28 = vmul.f32 -1.442695, %v1357_v14  ;;  %v2307_v14 = vmov 0  }
0x11e7   :  { %2175 = vpow2.f32 %v1862_v27  ;;  %2045 = vset.pattern.permute.xlu0 %v2307_v14  ;;  %2046 = vset.pattern.permute.xlu1 %v2307_v14 }
0x11e8   :  { %2177 = vpow2.f32 %v1863_v28 }
0x11ee   :  { %v2172_v21 = vpop.eup %2171 }
0x11ef   :  { %1386 = vrot.lane.b32.xlu0 %v2172_v21, %s2300_s13 }
0x11f0   :  { %v2174_v23 = vpop.eup %2173 }
0x11f1   :  { %1388 = vrot.lane.b32.xlu1 %v2174_v23, %s2300_s13  ;;  %v2176_v30 = vpop.eup %2175 }
0x11f2   :  { %v2178_v16 = vpop.eup %2177  ;;  %v1364_v18 = vadd.f32 1.0, %v2176_v30 }
0x11f3   :  { %1376 = vrot.lane.b32.xlu0 %v1372_v29, %s2304_s1  ;;  %v1365_v31 = vadd.f32 1.0, %v2178_v16  ;;  %v288_v16 = vld [vmem:[%s2789_s6] sm:$0xff] }
0x11f4   :  { %2179 = vrcp.f32 %v1364_v18  ;;  %vm435_vm2 = vcmp.gt.s32.totalorder %v288_v16, 0  ;;  %vm601_vm5 = vcmp.gt.s32.totalorder %v288_v16, 1  ;;  %vm768_vm7 = vcmp.gt.s32.totalorder %v288_v16, 2 }
0x11f5   :  { %1378 = vrot.lane.b32.xlu1 %v1373_v25, %s2304_s1  ;;  %2181 = vrcp.f32 %v1365_v31  ;;  %vm935_vm9 = vcmp.gt.s32.totalorder %v288_v16, 3  ;;  %vm1102_vm11 = vcmp.gt.s32.totalorder %v288_v16, 4  ;;  %vm1269_vm13 = vcmp.gt.s32.totalorder %v288_v16, 5 }
0x11f6   :  { %v1271_v42 = vsel %vm1269_vm13, 1, %v2307_v14  ;;  %vm1436_vm15 = vcmp.gt.s32.totalorder %v288_v16, 6 }
0x11fe   :  { %v2180_v17 = vpop.eup %2179 }
0x11ff   :  { %v2182_v8 = vpop.eup %2181 }
0x1261   :  { %v1387_v20 = vpop.permute.xlu0 %1386 }
0x1262   :  { %v1392_v32 = vmul.f32 %v2180_v17, %v1387_v20  ;;  %v289_v20 = vld [vmem:[%s2789_s6 + $0x8] sm:$0xff] }
0x1263   :  { %v1389_v10 = vpop.permute.xlu1 %1388  ;;  %vm436_vm3 = vcmp.gt.s32.totalorder %v289_v20, 0  ;;  %vm602_vm4 = vcmp.gt.s32.totalorder %v289_v20, 1  ;;  %vm769_vm6 = vcmp.gt.s32.totalorder %v289_v20, 2  ;;  %vm936_vm8 = vcmp.gt.s32.totalorder %v289_v20, 3 }
0x1264   :  { %1396 = vrot.lane.b32.xlu0 %v1392_v32, %s2304_s1  ;;  %v1393_v19 = vmul.f32 %v2182_v8, %v1389_v10  ;;  %vm1103_vm10 = vcmp.gt.s32.totalorder %v289_v20, 4  ;;  %vm1270_vm12 = vcmp.gt.s32.totalorder %v289_v20, 5  ;;  %vm1437_vm14 = vcmp.gt.s32.totalorder %v289_v20, 6 }
0x1265   :  { %v1377_v22 = vpop.permute.xlu0 %1376  ;;  %v1439_v43 = vsel %vm1437_vm14, 1, %v2307_v14  ;;  %vm1604_vm1 = vcmp.gt.s32.totalorder %v289_v20, 7 }
0x1266   :  { %1398 = vrot.lane.b32.xlu1 %v1393_v19, %s2304_s1  ;;  %v1382_v33 = vmul.f32 %v2180_v17, %v1377_v22  ;;  %v437_v19 = vsel %vm435_vm2, 1, %v2307_v14  ;;  %v438_v22 = vsel %vm436_vm3, 1, %v2307_v14  ;;  %vm1603_vm2 = vcmp.gt.s32.totalorder %v288_v16, 7 }
0x1267   :  { %v1379_v34 = vpop.permute.xlu1 %1378 }
0x1268   :  { %v1383_v37 = vmul.f32 %v2182_v8, %v1379_v34  ;;  %v603_v34 = vsel %vm601_vm5, 1, %v2307_v14 }
0x12d6   :  { %v1397_v35 = vpop.permute.xlu0 %1396 }
0x12d7   :  { %v1402_v36 = vadd.f32 %v1397_v35, %v1382_v33  ;;  %v604_v33 = vsel %vm602_vm4, 1, %v2307_v14  ;;  %v771_v35 = vsel %vm769_vm6, 1, %v2307_v14 }
0x12d8   :  { %v1399_v38 = vpop.permute.xlu1 %1398 }
0x12d9   :  { %2183 = vtanh.f32 %v1402_v36  ;;  %v1403_v39 = vadd.f32 %v1399_v38, %v1383_v37  ;;  %v938_v37 = vsel %vm936_vm8, 1, %v2307_v14  ;;  %v937_v38 = vsel %vm935_vm9, 1, %v2307_v14 }
0x12db   :  { %2185 = vtanh.f32 %v1403_v39 }
0x12e3   :  { %v2184_v40 = vpop.eup %2183 }
0x12e4   :  { %1408 = vrot.lane.b32.xlu0 %v2184_v40, %s2300_s13  ;;  %v1104_v40 = vsel %vm1102_vm11, 1, %v2307_v14 }
0x12e5   :  { %v2186_v41 = vpop.eup %2185 }
0x12e6   :  { %1410 = vrot.lane.b32.xlu1 %v2186_v41, %s2300_s13  ;;  %v1272_v41 = vsel %vm1270_vm12, 1, %v2307_v14 }
0x1356   :  { %v1409_v44 = vpop.permute.xlu0 %1408 }
0x1357   :  { %v2649_v45 = vmul.f32 %v2180_v17, %v1409_v44  ;;  %v1438_v44 = vsel %vm1436_vm15, 1, %v2307_v14 }
0x1358   :  { %v1411_v46 = vpop.permute.xlu1 %1410 }
0x1359   :  { %1428 = vrot.lane.b32.xlu0 %v2649_v45, %s2304_s1  ;;  %v2653_v47 = vmul.f32 %v2182_v8, %v1411_v46  ;;  %v1606_v46 = vsel %vm1604_vm1, 1, %v2307_v14 }
0x135b   :  { %1430 = vrot.lane.b32.xlu1 %v2653_v47, %s2304_s1 }
0x135d   :  { %1418 = vrot.lane.b32.xlu0 %v1402_v36, %s2306_s19  ;;  %v770_v36 = vsel %vm768_vm7, 1, %v2307_v14 }
0x135f   :  { %1420 = vrot.lane.b32.xlu1 %v1403_v39, %s2306_s19  ;;  %v1105_v39 = vsel %vm1103_vm10, 1, %v2307_v14 }
0x13cb   :  { %v1429_v48 = vpop.permute.xlu0 %1428 }
0x13cc   :  { %1434 = vst.msk [vmem:[#allocation4] sm:$0xff] %vm146_vm0, %v1429_v48  ;;  %v1605_v48 = vsel %vm1603_vm2, 1, %v2307_v14 }
0x13cd   :  { %v1431_v0 = vpop.permute.xlu1 %1430 }
0x13ce   :  { %1435 = vst.msk [vmem:[#allocation4 + $0x8] sm:$0xff] %vm146_vm0, %v1431_v0 }
0x13cf   :  { %v1419_v50 = vpop.permute.xlu0 %1418 }
0x13d0   :  { %1424 = vst.msk [vmem:[#allocation5] sm:$0xff] %vm146_vm0, %v1419_v50 }
0x13d1   :  { %v1421_v53 = vpop.permute.xlu1 %1420 }
0x13d2   :  { %1425 = vst.msk [vmem:[#allocation5 + $0x8] sm:$0xff] %vm146_vm0, %v1421_v53 }
0x13d3   :  { %v1460_v56 = vld [vmem:[#allocation4] sm:$0xff] }
0x13d5   :  { %v1461_v60 = vld [vmem:[#allocation4 + $0x8] sm:$0xff] }
0x13d6   :  { %v1462_v63 = vpack.c.bf16 %v1461_v60, %v1460_v56 }
0x13d7   :  { %v1539_v24 = vld [vmem:[#allocation5] sm:$0xff] }
0x13d8   :  { %2005 = vmatmul.mubr.msk.bf16.vlgmr.msra.gmra.mrb[28].mxu1 %vm146_vm0, %v1462_v63 }
0x13d9   :  { %v1540_v26 = vld [vmem:[#allocation5 + $0x8] sm:$0xff] }
0x14ab   :  { %v1516_v5 = vpop.f32.mrb[28].mxu1 }
0x14ac   :  { %v1523_v7 = vadd.f32 %v1516_v5, %v262_v4  ;;  %v2006_v9 = vpop.f32.mrb[29].mxu1 }
0x14ad   :  { %v1519_v11 = vpop.f32.mrb[30].mxu1 }
0x14ae   :  { %2187 = vtanh.f32 %v1523_v7  ;;  %v1524_v12 = vadd.f32 %v1519_v11, %v265_v6  ;;  %v2007_v13 = vpop.f32.mrb[31].mxu1  ;;  %v1867_v23 = vmul.f32 -1.442695, %v1523_v7  ;;  %v2073_v6 = vld [vmem:[%s2787_s4] sm:$0xff]   ;;  %v2074_v11 = vld [vmem:[%s2787_s4 + $0x8] sm:$0xff]  }
0x14af   :  { %2008 = vmatprep.subr.bf16.mxu0 %v2073_v6 }
0x14b0   :  { %2189 = vtanh.f32 %v1524_v12  ;;  %v1868_v29 = vmul.f32 -1.442695, %v1524_v12  ;;  %2009 = vmatpush3.bf16.msra.mxu0 %v2073_v6 }
0x14b1   :  { %2191 = vpow2.f32 %v1867_v23  ;;  %2010 = vmatprep.subr.bf16.mxu0 %v2074_v11 }
0x14b2   :  { %2193 = vpow2.f32 %v1868_v29 }
0x14b4   :  { %2011 = vmatpush3.bf16.msra.mxu0 %v2074_v11  ;;  %v1869_v11 = vld [vmem:[%s2788_s5] ss:$0 sm:$0xff]  ;;  %s2308_s5 = smov [#allocation12]  }
0x14b5   :  { %s1797_s26 = sshll.u32 %s2308_s5, 4  ;;  %s1798_s26 = int_to_ptr.vmem [resolvable:$true] %s1797_s26 }
0x14b6   :  { %s2270_s28 = scalar_lea.vmem %s1798_s26, 2048  ;;  %p2275_p11 = scmp.lt.s32.totalorder %s1798_s26, %s1798_s26 }
0x14b7   :  { %p2271_p10 = scmp.ne.s32.totalorder %s1798_s26, %s2270_s28  ;;  %p2276_p12 = scmp.lt.s32.totalorder %s2270_s28, %s2270_s28 }
0x14b8   :  { %v2188_v15 = vpop.eup %2187 }
0x14b9   :  { %1553 = vrot.lane.b32.xlu0 %v2188_v15, %s2300_s13  ;;  %p2277_p13 = por %p2276_p12, %p2275_p11 }
0x14ba   :  { %v2190_v21 = vpop.eup %2189 }
0x14bb   :  { %1555 = vrot.lane.b32.xlu1 %v2190_v21, %s2300_s13  ;;  %v2192_v25 = vpop.eup %2191  ;;  %p2278_p0 = pnand %p2277_p13, %p2271_p10 }
0x14bc   :  { %v2194_v27 = vpop.eup %2193  ;;  %v1531_v28 = vadd.f32 1.0, %v2192_v25 }
0x14bd   :  { %1543 = vrot.lane.b32.xlu0 %v1539_v24, %s2304_s1  ;;  %v1532_v30 = vadd.f32 1.0, %v2194_v27 }
0x14be   :  { %2195 = vrcp.f32 %v1531_v28 }
0x14bf   :  { %1545 = vrot.lane.b32.xlu1 %v1540_v26, %s2304_s1  ;;  %2197 = vrcp.f32 %v1532_v30 }
0x14c8   :  { %v2675_v18 = vpop.eup %2195 }
0x14c9   :  { %v2681_v32 = vpop.eup %2197 }
0x152b   :  { %v1554_v31 = vpop.permute.xlu0 %1553 }
0x152c   :  { %v1559_v17 = vmul.f32 %v2675_v18, %v1554_v31 }
0x152d   :  { %v1556_v8 = vpop.permute.xlu1 %1555 }
0x152e   :  { %1563 = vrot.lane.b32.xlu0 %v1559_v17, %s2304_s1  ;;  %v1560_v10 = vmul.f32 %v2681_v32, %v1556_v8 }
0x152f   :  { %v1544_v0 = vpop.permute.xlu0 %1543 }
0x1530   :  { %1565 = vrot.lane.b32.xlu1 %v1560_v10, %s2304_s1  ;;  %v1549_v50 = vmul.f32 %v2675_v18, %v1544_v0 }
0x1531   :  { %v1546_v53 = vpop.permute.xlu1 %1545 }
0x1532   :  { %440 = vperm.xlu0 %2045, %v437_v19   ;;  %v1550_v63 = vmul.f32 %v2681_v32, %v1546_v53 }
0x1534   :  { %443 = vperm.xlu1 %2046, %v438_v22  }
0x1536   :  { %609 = vperm.xlu0 %2045, %v604_v33  }
0x1538   :  { %606 = vperm.xlu1 %2046, %v603_v34  }
0x153a   :  { %776 = vperm.xlu0 %2045, %v771_v35  }
0x153c   :  { %773 = vperm.xlu1 %2046, %v770_v36  }
0x153e   :  { %943 = vperm.xlu0 %2045, %v938_v37  }
0x1540   :  { %940 = vperm.xlu1 %2046, %v937_v38  }
0x1542   :  { %1110 = vperm.xlu0 %2045, %v1105_v39  }
0x1544   :  { %1107 = vperm.xlu1 %2046, %v1104_v40  }
0x1546   :  { %1277 = vperm.xlu0 %2045, %v1272_v41  }
0x1548   :  { %1274 = vperm.xlu1 %2046, %v1271_v42  }
0x154a   :  { %1444 = vperm.xlu0 %2045, %v1439_v43  }
0x154c   :  { %1441 = vperm.xlu1 %2046, %v1438_v44  }
0x154e   :  { %1611 = vperm.xlu0 %2045, %v1606_v46  }
0x1550   :  { %1608 = vperm.xlu1 %2046, %v1605_v48  }
0x15a0   :  { %v1564_v56 = vpop.permute.xlu0 %1563 }
0x15a1   :  { %v2703_v60 = vadd.f32 %v1564_v56, %v1549_v50 }
0x15a2   :  { %v1566_v2 = vpop.permute.xlu1 %1565 }
0x15a3   :  { %2199 = vtanh.f32 %v2703_v60  ;;  %v2707_v4 = vadd.f32 %v1566_v2, %v1550_v63 }
0x15a5   :  { %2201 = vtanh.f32 %v2707_v4 }
0x15ad   :  { %v2200_v5 = vpop.eup %2199 }
0x15ae   :  { %1575 = vrot.lane.b32.xlu1 %v2200_v5, %s2300_s13 }
0x15af   :  { %v2202_v7 = vpop.eup %2201 }
0x15b0   :  { %1577 = vrot.lane.b32.xlu0 %v2202_v7, %s2300_s13 }
0x15b1   :  { %v441_v9 = vpop.permute.xlu0 %440 }
0x15b2   :  { %vm445_vm3 = vcmp.eq.s32.totalorder %v441_v9, 1 }
0x15b3   :  { %v444_v12 = vpop.permute.xlu1 %443  ;;  %v447_v14 = vsel %vm445_vm3, %v2460_v1, 0.0 }
0x15b4   :  { %vm446_vm4 = vcmp.eq.s32.totalorder %v444_v12, 1 }
0x15b5   :  { %v610_v13 = vpop.permute.xlu0 %609  ;;  %v448_v15 = vsel %vm446_vm4, %v2465_v3, 0.0 }
0x15b6   :  { %v449_v21 = vpack.c.bf16 %v448_v15, %v447_v14  ;;  %vm612_vm5 = vcmp.eq.s32.totalorder %v610_v13, 1 }
0x15b7   :  { %v607_v24 = vpop.permute.xlu1 %606  ;;  %v614_v23 = vsel %vm612_vm5, %v2500_v61, 0.0 }
0x15b8   :  { %vm611_vm6 = vcmp.eq.s32.totalorder %v607_v24, 1  ;;  %451 = vrot.lane.b32.xlu1 %v449_v21, %s2304_s1 }
0x15b9   :  { %v777_v26 = vpop.permute.xlu0 %776  ;;  %v613_v29 = vsel %vm611_vm6, %v2495_v59, 0.0 }
0x15ba   :  { %v615_v25 = vpack.c.bf16 %v614_v23, %v613_v29  ;;  %vm779_vm7 = vcmp.eq.s32.totalorder %v777_v26, 1 }
0x15bb   :  { %v774_v27 = vpop.permute.xlu1 %773  ;;  %v781_v3 = vsel %vm779_vm7, %v2533_v62, 0.0 }
0x15bc   :  { %vm778_vm8 = vcmp.eq.s32.totalorder %v774_v27, 1  ;;  %617 = vrot.lane.b32.xlu0 %v615_v25, %s2304_s1 }
0x15bd   :  { %v944_v1 = vpop.permute.xlu0 %943  ;;  %v780_v28 = vsel %vm778_vm8, %v2528_v58, 0.0 }
0x15be   :  { %v782_v30 = vpack.c.bf16 %v781_v3, %v780_v28  ;;  %vm946_vm9 = vcmp.eq.s32.totalorder %v944_v1, 1 }
0x15bf   :  { %v941_v16 = vpop.permute.xlu1 %940  ;;  %v948_v59 = vsel %vm946_vm9, %v2564_v57, 0.0 }
0x15c0   :  { %vm945_vm10 = vcmp.eq.s32.totalorder %v941_v16, 1  ;;  %784 = vrot.lane.b32.xlu1 %v782_v30, %s2304_s1 }
0x15c1   :  { %v1111_v61 = vpop.permute.xlu0 %1110  ;;  %v947_v31 = vsel %vm945_vm10, %v2560_v55, 0.0 }
0x15c2   :  { %v949_v17 = vpack.c.bf16 %v948_v59, %v947_v31  ;;  %vm1113_vm11 = vcmp.eq.s32.totalorder %v1111_v61, 1 }
0x15c3   :  { %v1108_v20 = vpop.permute.xlu1 %1107  ;;  %v1115_v58 = vsel %vm1113_vm11, %v2595_v54, 0.0 }
0x15c4   :  { %vm1112_vm12 = vcmp.eq.s32.totalorder %v1108_v20, 1  ;;  %951 = vrot.lane.b32.xlu0 %v949_v17, %s2304_s1 }
0x15c5   :  { %v1278_v62 = vpop.permute.xlu0 %1277  ;;  %v1114_v8 = vsel %vm1112_vm12, %v2590_v52, 0.0 }
0x15c6   :  { %v1116_v10 = vpack.c.bf16 %v1115_v58, %v1114_v8  ;;  %vm1280_vm13 = vcmp.eq.s32.totalorder %v1278_v62, 1 }
0x15c7   :  { %v1275_v19 = vpop.permute.xlu1 %1274  ;;  %v1282_v55 = vsel %vm1280_vm13, %v2625_v51, 0.0 }
0x15c8   :  { %vm1279_vm14 = vcmp.eq.s32.totalorder %v1275_v19, 1  ;;  %1118 = vrot.lane.b32.xlu1 %v1116_v10, %s2304_s1 }
0x15c9   :  { %v1445_v57 = vpop.permute.xlu0 %1444  ;;  %v1281_v22 = vsel %vm1279_vm14, %v2621_v49, 0.0 }
0x15ca   :  { %v1283_v33 = vpack.c.bf16 %v1282_v55, %v1281_v22  ;;  %vm1447_vm15 = vcmp.eq.s32.totalorder %v1445_v57, 1 }
0x15cb   :  { %v1442_v34 = vpop.permute.xlu1 %1441  ;;  %v1449_v54 = vsel %vm1447_vm15, %v2653_v47, 0.0 }
0x15cc   :  { %vm1446_vm1 = vcmp.eq.s32.totalorder %v1442_v34, 1  ;;  %1285 = vrot.lane.b32.xlu0 %v1283_v33, %s2304_s1 }
0x15cd   :  { %v1448_v52 = vsel %vm1446_vm1, %v2649_v45, 0.0  ;;  %v1612_v51 = vpop.permute.xlu0 %1611 }
0x15ce   :  { %v1450_v35 = vpack.c.bf16 %v1449_v54, %v1448_v52  ;;  %vm1614_vm3 = vcmp.eq.s32.totalorder %v1612_v51, 1 }
0x15cf   :  { %v1609_v36 = vpop.permute.xlu1 %1608 }
0x15d0   :  { %1452 = vrot.lane.b32.xlu1 %v1450_v35, %s2304_s1  ;;  %vm1613_vm2 = vcmp.eq.s32.totalorder %v1609_v36, 1 }
0x15d4   :  { %1585 = vrot.lane.b32.xlu1 %v2703_v60, %s2306_s19 }
0x1620   :  { %v1576_v37 = vpop.permute.xlu1 %1575 }
0x1621   :  { %v1581_v49 = vmul.f32 %v2675_v18, %v1576_v37 }
0x1622   :  { %v1578_v38 = vpop.permute.xlu0 %1577 }
0x1623   :  { %1595 = vrot.lane.b32.xlu1 %v1581_v49, %s2304_s1  ;;  %v1582_v39 = vmul.f32 %v2681_v32, %v1578_v38  ;;  %v1615_v47 = vsel %vm1613_vm2, %v1581_v49, 0.0 }
0x1625   :  { %v1616_v45 = vsel %vm1614_vm3, %v1582_v39, 0.0 }
0x1626   :  { %v1617_v40 = vpack.c.bf16 %v1616_v45, %v1615_v47 }
0x1628   :  { %1619 = vrot.lane.b32.xlu0 %v1617_v40, %s2304_s1 }
0x162a   :  { %v452_v41 = vpop.permute.xlu1 %451 }
0x162b   :  { %454 = vst.msk [vmem:[#allocation3] sm:$0xff] %vm146_vm0, %v452_v41 }
0x162c   :  { %1587 = vrot.lane.b32.xlu0 %v2707_v4, %s2306_s19 }
0x162e   :  { %v618_v42 = vpop.permute.xlu0 %617 }
0x162f   :  { %621 = vst.msk [vmem:[#allocation3 + $0x8] sm:$0xff] %vm146_vm0, %v618_v42 }
0x1630   :  { %1597 = vrot.lane.b32.xlu0 %v1582_v39, %s2304_s1 }
0x1632   :  { %v785_v18 = vpop.permute.xlu1 %784  ;;  %v1624_v32 = vld [vmem:[#allocation3] sm:$0xff] }
0x1633   :  { %788 = vst.msk [vmem:[#allocation3 + $0x10] sm:$0xff] %vm146_vm0, %v785_v18  ;;  %2012 = vmatprep.mubr.msk.bf16.mxu0 %vm146_vm0, %v1624_v32 }
0x1636   :  { %v952_v43 = vpop.permute.xlu0 %951  ;;  %v1625_v44 = vld [vmem:[#allocation3 + $0x8] sm:$0xff] }
0x1637   :  { %955 = vst.msk [vmem:[#allocation3 + $0x18] sm:$0xff] %vm146_vm0, %v952_v43  ;;  %2013 = vmatmul.mubr.msk.bf16.vlgmr.msra.gmra.mrb[16].mxu0 %vm146_vm0, %v1625_v44 }
0x163a   :  { %v1119_v46 = vpop.permute.xlu1 %1118  ;;  %v1626_v48 = vld [vmem:[#allocation3 + $0x10] sm:$0xff] }
0x163b   :  { %1122 = vst.msk [vmem:[#allocation3 + $0x20] sm:$0xff] %vm146_vm0, %v1119_v46  ;;  %2016 = vmatprep.mubr.msk.bf16.mxu0 %vm146_vm0, %v1626_v48 }
0x163e   :  { %v1286_v0 = vpop.permute.xlu0 %1285  ;;  %v1627_v50 = vld [vmem:[#allocation3 + $0x18] sm:$0xff] }
0x163f   :  { %1289 = vst.msk [vmem:[#allocation3 + $0x28] sm:$0xff] %vm146_vm0, %v1286_v0  ;;  %2017 = vmatmul.mubr.msk.bf16.gmra.mrb[20].mxu0 %vm146_vm0, %v1627_v50 }
0x1642   :  { %v1453_v53 = vpop.permute.xlu1 %1452  ;;  %v1628_v56 = vld [vmem:[#allocation3 + $0x20] sm:$0xff] }
0x1643   :  { %1456 = vst.msk [vmem:[#allocation3 + $0x30] sm:$0xff] %vm146_vm0, %v1453_v53  ;;  %2020 = vmatprep.mubr.msk.bf16.mxu0 %vm146_vm0, %v1628_v56 }
0x1646   :  { %v1586_v60 = vpop.permute.xlu1 %1585  ;;  %v1629_v63 = vld [vmem:[#allocation3 + $0x28] sm:$0xff] }
0x1647   :  { %1591 = vst.msk [vmem:[#allocation5] sm:$0xff] %vm146_vm0, %v1586_v60  ;;  %2021 = vmatmul.mubr.msk.bf16.gmra.mrb[24].mxu0 %vm146_vm0, %v1629_v63 }
0x164a   :  { %v1630_v2 = vld [vmem:[#allocation3 + $0x30] sm:$0xff] }
0x164b   :  { %2024 = vmatprep.mubr.msk.bf16.mxu0 %vm146_vm0, %v1630_v2 }
0x1695   :  { %v1596_v4 = vpop.permute.xlu1 %1595 }
0x1696   :  { %1601 = vst.msk [vmem:[#allocation4] sm:$0xff] %vm146_vm0, %v1596_v4 }
0x169a   :  { %v1620_v5 = vpop.permute.xlu0 %1619 }
0x169b   :  { %1623 = vst.msk [vmem:[#allocation3 + $0x38] sm:$0xff] %vm146_vm0, %v1620_v5 }
0x169e   :  { %v1588_v6 = vpop.permute.xlu0 %1587 }
0x169f   :  { %1592 = vst.msk [vmem:[#allocation5 + $0x8] sm:$0xff] %vm146_vm0, %v1588_v6 }
0x16a2   :  { %v1598_v7 = vpop.permute.xlu0 %1597  ;;  %v1631_v9 = vld [vmem:[#allocation3 + $0x38] sm:$0xff] }
0x16a3   :  { %1602 = vst.msk [vmem:[#allocation4 + $0x8] sm:$0xff] %vm146_vm0, %v1598_v7  ;;  %2025 = vmatmul.mubr.msk.bf16.gmra.mrb[28].mxu0 %vm146_vm0, %v1631_v9 }
0x170a   :  { %v2014_v12 = vpop.f32.mrb[16].mxu0 }
0x170b   :  { %v1722_v13 = vadd.f32 %v2014_v12, %v1869_v11  ;;  %v1713_v14 = vpop.f32.mrb[17].mxu0 }
0x170c   :  { %v1714_v15 = vadd.f32 %v1869_v11, %v1713_v14  ;;  %v2015_v21 = vpop.f32.mrb[18].mxu0 }
0x170d   :  { %1778 = vst [vmem:[#allocation12 + $0x10] sm:$0xff] %v1722_v13  ;;  %v1725_v24 = vadd.f32 %v2015_v21, %v1869_v11  ;;  %v1716_v26 = vpop.f32.mrb[19].mxu0 }
0x170e   :  { %1776 = vst [vmem:[#allocation12] sm:$0xff] %v1714_v15  ;;  %v1717_v23 = vadd.f32 %v1869_v11, %v1716_v26 }
0x170f   :  { %1779 = vst [vmem:[#allocation12 + $0x18] sm:$0xff] %v1725_v24 }
0x1710   :  { %1777 = vst [vmem:[#allocation12 + $0x8] sm:$0xff] %v1717_v23 }
0x1712   :  { %v2018_v29 = vpop.f32.mrb[20].mxu0 }
0x1713   :  { %v1738_v25 = vadd.f32 %v2018_v29, %v1869_v11  ;;  %v1729_v27 = vpop.f32.mrb[21].mxu0 }
0x1714   :  { %v1730_v1 = vadd.f32 %v1869_v11, %v1729_v27  ;;  %v2019_v3 = vpop.f32.mrb[22].mxu0 }
0x1715   :  { %1782 = vst [vmem:[#allocation12 + $0x30] sm:$0xff] %v1738_v25  ;;  %v1741_v28 = vadd.f32 %v2019_v3, %v1869_v11  ;;  %v1732_v30 = vpop.f32.mrb[23].mxu0 }
0x1716   :  { %1780 = vst [vmem:[#allocation12 + $0x20] sm:$0xff] %v1730_v1  ;;  %v1733_v16 = vadd.f32 %v1869_v11, %v1732_v30 }
0x1717   :  { %1783 = vst [vmem:[#allocation12 + $0x38] sm:$0xff] %v1741_v28 }
0x1718   :  { %1781 = vst [vmem:[#allocation12 + $0x28] sm:$0xff] %v1733_v16 }
0x171a   :  { %v2022_v61 = vpop.f32.mrb[24].mxu0 }
0x171b   :  { %v1754_v59 = vadd.f32 %v2022_v61, %v1869_v11  ;;  %v1745_v31 = vpop.f32.mrb[25].mxu0 }
0x171c   :  { %v1746_v17 = vadd.f32 %v1869_v11, %v1745_v31  ;;  %v2023_v20 = vpop.f32.mrb[26].mxu0 }
0x171d   :  { %1786 = vst [vmem:[#allocation12 + $0x50] sm:$0xff] %v1754_v59  ;;  %v1757_v62 = vadd.f32 %v2023_v20, %v1869_v11  ;;  %v1748_v58 = vpop.f32.mrb[27].mxu0 }
0x171e   :  { %1784 = vst [vmem:[#allocation12 + $0x40] sm:$0xff] %v1746_v17  ;;  %v1749_v8 = vadd.f32 %v1869_v11, %v1748_v58 }
0x171f   :  { %1787 = vst [vmem:[#allocation12 + $0x58] sm:$0xff] %v1757_v62 }
0x1720   :  { %1785 = vst [vmem:[#allocation12 + $0x48] sm:$0xff] %v1749_v8 }
0x1776   :  { %v2026_v10 = vpop.f32.mrb[28].mxu0 }
0x1777   :  { %v1770_v19 = vadd.f32 %v2026_v10, %v1869_v11  ;;  %v1761_v57 = vpop.f32.mrb[29].mxu0 }
0x1778   :  { %v1762_v55 = vadd.f32 %v1869_v11, %v1761_v57  ;;  %v2027_v22 = vpop.f32.mrb[30].mxu0 }
0x1779   :  { %1790 = vst [vmem:[#allocation12 + $0x70] sm:$0xff] %v1770_v19  ;;  %v1773_v33 = vadd.f32 %v2027_v22, %v1869_v11  ;;  %v1764_v34 = vpop.f32.mrb[31].mxu0 }
0x177a   :  { %1788 = vst [vmem:[#allocation12 + $0x60] sm:$0xff] %v1762_v55  ;;  %v1765_v54 = vadd.f32 %v1869_v11, %v1764_v34 }
0x177b   :  { %1791 = vst [vmem:[#allocation12 + $0x78] sm:$0xff] %v1773_v33 }
0x177c   :  { %1789 = vst [vmem:[#allocation12 + $0x68] sm:$0xff] %v1765_v54 }
0x177d   :  { %2281 = shalt.err (!%p2278_p0)
}
0x177e   :  { %s2282_s8 = scalar_lea.hbm %s2790_s7, 2048 }
0x177f   :  { %p2283_p1 = scmp.ne.s32.totalorder %s2790_s7, %s2282_s8  ;;  %p2286_p2 = scmp.lt.u32.totalorder %s2282_s8, %s2790_s7 }
0x1781   :  { %p2288_p3 = pnand %p2286_p2, %p2283_p1 }
0x1783   :  { %2291 = shalt.err (!%p2288_p3)
}
0x1784   :  { %s2309_s15 = smov 128   ;;  %s2310_s0 = smov 8  }
0x1785   :  { %1803 = dma.vmem_to_hbm [thread:$0]  %s1798_s26, 2048, %s2790_s7, [#allocation8], %s2309_s15, %s2309_s15, %s2310_s0  }
0x1786   :  { %2296 = dma.done.wait [#allocation8], 2048  }
0x1787   :  { %2297 = vsyncadd [#allocation8], 4294965248 }
0x1788   :  { %1807 = vsyncpa [#allocation7], 1 }
0x1789   :  { %1808 = vsyncpa [#allocation10], 1 }
0x178a   :  { %1809 = vsyncpa [#allocation8], 1 }

</bundles_post_ra>
